<compile_context>
chip_gen: v7x
topology: tpu7x:2x2x1
jax: 0.10.0
libtpu: 0.0.40
codegen_flags: <defaults>
</compile_context>

<pallas_src>
import functools

import jax
import jax.numpy as jnp
from jax.experimental import pallas as pl
from jax.experimental.pallas import tpu as pltpu


def _round_up(x, m):
    return ((x + m - 1) // m) * m


def _elementwise_dtype():
    """bf16 elementwise on chips with bf16 VALUs (v6e/v7x); f32 otherwise (<= v5)."""
    try:
        kind = jax.devices()[0].device_kind.lower()
    except Exception:
        return jnp.float32
    if "tpu" not in kind:
        return jnp.float32
    for old_gen in ("v2", "v3", "v4", "v5"):
        if old_gen in kind:
            return jnp.float32
    return jnp.bfloat16


def _mlp_kernel(x_ref, w1_ref, b1_ref, w2_ref, b2_ref, w3_ref, b3_ref, o_ref,
                *, ew_dtype):
    # fc1 + ReLU : [TM, I] @ [I, H] -> [TM, H]   (bf16 MXU, f32 accumulate)
    xb = x_ref[...].astype(jnp.bfloat16)
    h1 = jnp.dot(xb, w1_ref[...], preferred_element_type=jnp.float32)
    h1 = jnp.maximum(h1.astype(ew_dtype) + b1_ref[...], 0).astype(jnp.bfloat16)

    # fc2 + ReLU : [TM, H] @ [H, H] -> [TM, H]
    h2 = jnp.dot(h1, w2_ref[...], preferred_element_type=jnp.float32)
    h2 = jnp.maximum(h2.astype(ew_dtype) + b2_ref[...], 0).astype(jnp.float32)

    # fc3 + Sigmoid : VPU multiply + lane (XLU) reduction over H, f32 for
    # accuracy; avoids an N=1 MXU matmul.  Output block is (TM, 1).
    logits = jnp.sum(h2 * w3_ref[...], axis=1, keepdims=True) + b3_ref[...]
    o_ref[...] = jax.nn.sigmoid(logits).astype(o_ref.dtype)


def feedforward_pallas(x, w1, b1, w2, b2, w3, b3, *, block_b=8192):
    """Fused 3-layer MLP forward (fc1->ReLU->fc2->ReLU->fc3->Sigmoid).

    x:  [B, input_size]            float32
    w1: [hidden, input_size]       (torch Linear layout),  b1: [hidden]
    w2: [hidden, hidden],                                  b2: [hidden]
    w3: [1, hidden],                                       b3: [1]
    returns: [B, 1] float32 (sigmoid output)
    """
    assert block_b % 512 == 0, "batch tile must be a multiple of 512"
    B, I = x.shape
    H = w1.shape[0]

    if x.dtype != jnp.float32:
        x = x.astype(jnp.float32)

    ew = _elementwise_dtype()

    # Batch tile: multiple of 512, capped so B > 512 produces >= 2 grid tiles
    # (keeps both v7x TensorCores busy).  Ragged tail handled by Pallas
    # partial-block padding/masking -- no wrapper-side pad pass over x.
    TM = min(block_b, _round_up(pl.cdiv(B, 2), 512))
    n_tiles = pl.cdiv(B, TM)

    # Weights/biases are tiny: one-time transpose/cast, kept VMEM-resident.
    w1t = w1.T.astype(jnp.bfloat16)                 # [I, H]
    w2t = w2.T.astype(jnp.bfloat16)                 # [H, H]
    b1r = b1.reshape(1, H).astype(ew)               # [1, H]
    b2r = b2.reshape(1, H).astype(ew)               # [1, H]
    w3r = w3.reshape(1, H).astype(jnp.float32)      # [1, H] (row of fc3)
    b3r = b3.reshape(1, 1).astype(jnp.float32)      # [1, 1]

    resident = lambda i: (0, 0)                     # weights/biases stay put

    out = pl.pallas_call(
        functools.partial(_mlp_kernel, ew_dtype=ew),
        out_shape=jax.ShapeDtypeStruct((B, 1), jnp.float32),
        grid_spec=pltpu.PrefetchScalarGridSpec(
            num_scalar_prefetch=0,
            grid=(n_tiles,),
            in_specs=[
                pl.BlockSpec((TM, I), lambda i: (i, 0)),   # x tile (streamed)
                pl.BlockSpec((I, H), resident),            # w1.T
                pl.BlockSpec((1, H), resident),            # b1
                pl.BlockSpec((H, H), resident),            # w2.T
                pl.BlockSpec((1, H), resident),            # b2
                pl.BlockSpec((1, H), resident),            # w3 row
                pl.BlockSpec((1, 1), resident),            # b3
            ],
            out_specs=pl.BlockSpec((TM, 1), lambda i: (i, 0)),
        ),
        compiler_params=pltpu.CompilerParams(
            dimension_semantics=("parallel",),             # megacore on v7x
            vmem_limit_bytes=32 * 1024 * 1024,             # lifts v5e's 16 MiB default
        ),
    )(x, w1t, b1r, w2t, b2r, w3r, b3r)

    return out                                             # [B, 1], no relayout


def init_params(key, input_size, hidden_size):
    """Deterministic init matching torch.nn.Linear's default
    U(-1/sqrt(fan_in), 1/sqrt(fan_in)); weights stored in torch [out, in] layout."""
    ks = jax.random.split(key, 6)

    def uniform(k, shape, fan_in):
        bound = 1.0 / jnp.sqrt(jnp.float32(fan_in))
        return jax.random.uniform(k, shape, jnp.float32, -bound, bound)

    w1 = uniform(ks[0], (hidden_size, input_size), input_size)
    b1 = uniform(ks[1], (hidden_size,), input_size)
    w2 = uniform(ks[2], (hidden_size, hidden_size), hidden_size)
    b2 = uniform(ks[3], (hidden_size,), hidden_size)
    w3 = uniform(ks[4], (1, hidden_size), hidden_size)
    b3 = uniform(ks[5], (1,), hidden_size)
    return w1, b1, w2, b2, w3, b3


def reference_forward(x, w1, b1, w2, b2, w3, b3):
    h1 = jnp.maximum(x @ w1.T + b1, 0.0)
    h2 = jnp.maximum(h1 @ w2.T + b2, 0.0)
    return jax.nn.sigmoid(h2 @ w3.T + b3)


if __name__ == "__main__":
    key = jax.random.PRNGKey(0)
    k_params, k_x1, k_x2 = jax.random.split(key, 3)

    input_size = 16
    hidden_size = 32
    params = init_params(k_params, input_size, hidden_size)

    # Case 1: tiny batch -> single (partial) tile; OOB tail reads/writes are
    # padded/dropped by Pallas.
    batch = 8
    x = jax.random.normal(k_x1, (batch, input_size), jnp.float32)
    out = jax.block_until_ready(feedforward_pallas(x, *params))
    ref = reference_forward(x, *params)
    assert out.shape == (batch, 1), out.shape
    # bf16 x/weights (and bf16 bias+ReLU on v6e/v7x) -> loosened tolerance.
    assert jnp.allclose(out, ref, atol=2e-2, rtol=0.0), "mismatch vs reference (case 1)"

    # Case 2: multi-tile grid with ragged tail (exercises tiling + partial-block path).
    batch2 = 1300
    x2 = jax.random.normal(k_x2, (batch2, input_size), jnp.float32)
    out2 = jax.block_until_ready(feedforward_pallas(x2, *params, block_b=512))
    ref2 = reference_forward(x2, *params)
    assert out2.shape == (batch2, 1), out2.shape
    assert jnp.allclose(out2, ref2, atol=2e-2, rtol=0.0), "mismatch vs reference (case 2)"

    print("KERNEL_OK")
</pallas_src>

<mosaic_0001>
module attributes {stable_mosaic.version = 11 : i64} {
  func.func @_mlp_kernel(%arg0: i32, %arg1: memref<512x16xf32, #tpu.memory_space<vmem>>, %arg2: memref<16x32xbf16, #tpu.memory_space<vmem>>, %arg3: memref<1x32xf32, #tpu.memory_space<vmem>>, %arg4: memref<32x32xbf16, #tpu.memory_space<vmem>>, %arg5: memref<1x32xf32, #tpu.memory_space<vmem>>, %arg6: memref<1x32xf32, #tpu.memory_space<vmem>>, %arg7: memref<1x1xf32, #tpu.memory_space<vmem>>, %arg8: memref<512x1xf32, #tpu.memory_space<vmem>>) attributes {dimension_semantics = [#tpu.dimension_semantics<parallel>], iteration_bounds = array<i64: 1>, scalar_prefetch = 0 : i64, scratch_operands = 0 : i64, tpu.core_type = #tpu.core_type<tc>, window_params = [{transform_indices = @transform_0, window_bounds = array<i64: 512, 16>}, {pipeline_mode = #tpu.pipeline_mode<synchronous>, transform_indices = @transform_1, window_bounds = array<i64: 16, 32>}, {pipeline_mode = #tpu.pipeline_mode<synchronous>, transform_indices = @transform_2, window_bounds = array<i64: 1, 32>}, {pipeline_mode = #tpu.pipeline_mode<synchronous>, transform_indices = @transform_3, window_bounds = array<i64: 32, 32>}, {pipeline_mode = #tpu.pipeline_mode<synchronous>, transform_indices = @transform_4, window_bounds = array<i64: 1, 32>}, {pipeline_mode = #tpu.pipeline_mode<synchronous>, transform_indices = @transform_5, window_bounds = array<i64: 1, 32>}, {pipeline_mode = #tpu.pipeline_mode<synchronous>, transform_indices = @transform_6, window_bounds = array<i64: 1, 1>}, {transform_indices = @transform_7, window_bounds = array<i64: 512, 1>}]} {
    %c0 = arith.constant 0 : index
    %c0_0 = arith.constant 0 : index
    %0 = vector.load %arg1[%c0, %c0_0] : memref<512x16xf32, #tpu.memory_space<vmem>>, vector<512x16xf32>
    %1 = arith.truncf %0 : vector<512x16xf32> to vector<512x16xbf16>
    %c0_1 = arith.constant 0 : index
    %c0_2 = arith.constant 0 : index
    %2 = vector.load %arg2[%c0_1, %c0_2] : memref<16x32xbf16, #tpu.memory_space<vmem>>, vector<16x32xbf16>
    %cst = arith.constant dense<0.000000e+00> : vector<512x32xf32>
    %3 = tpu.matmul %1, %2, %cst {dimension_numbers = #tpu.dot_dimension_numbers<[1], [0], [0], [1], [0, 0, 1, 1], [], []>} : vector<512x16xbf16>, vector<16x32xbf16>, vector<512x32xf32> -> vector<512x32xf32>
    %c0_3 = arith.constant 0 : index
    %c0_4 = arith.constant 0 : index
    %4 = vector.load %arg3[%c0_3, %c0_4] : memref<1x32xf32, #tpu.memory_space<vmem>>, vector<1x32xf32>
    %5 = vector.broadcast %4 : vector<1x32xf32> to vector<512x32xf32>
    %6 = arith.addf %3, %5 : vector<512x32xf32>
    %cst_5 = arith.constant 0.000000e+00 : f32
    %7 = vector.broadcast %cst_5 : f32 to vector<512x32xf32>
    %8 = arith.maximumf %6, %7 : vector<512x32xf32>
    %9 = arith.truncf %8 : vector<512x32xf32> to vector<512x32xbf16>
    %c0_6 = arith.constant 0 : index
    %c0_7 = arith.constant 0 : index
    %10 = vector.load %arg4[%c0_6, %c0_7] : memref<32x32xbf16, #tpu.memory_space<vmem>>, vector<32x32xbf16>
    %cst_8 = arith.constant dense<0.000000e+00> : vector<512x32xf32>
    %11 = tpu.matmul %9, %10, %cst_8 {dimension_numbers = #tpu.dot_dimension_numbers<[1], [0], [0], [1], [0, 0, 1, 1], [], []>} : vector<512x32xbf16>, vector<32x32xbf16>, vector<512x32xf32> -> vector<512x32xf32>
    %c0_9 = arith.constant 0 : index
    %c0_10 = arith.constant 0 : index
    %12 = vector.load %arg5[%c0_9, %c0_10] : memref<1x32xf32, #tpu.memory_space<vmem>>, vector<1x32xf32>
    %13 = vector.broadcast %12 : vector<1x32xf32> to vector<512x32xf32>
    %14 = arith.addf %11, %13 : vector<512x32xf32>
    %cst_11 = arith.constant 0.000000e+00 : f32
    %15 = vector.broadcast %cst_11 : f32 to vector<512x32xf32>
    %16 = arith.maximumf %14, %15 : vector<512x32xf32>
    %c0_12 = arith.constant 0 : index
    %c0_13 = arith.constant 0 : index
    %17 = vector.load %arg6[%c0_12, %c0_13] : memref<1x32xf32, #tpu.memory_space<vmem>>, vector<1x32xf32>
    %18 = vector.broadcast %17 : vector<1x32xf32> to vector<512x32xf32>
    %19 = arith.mulf %16, %18 : vector<512x32xf32>
    %cst_14 = arith.constant dense<0.000000e+00> : vector<512xf32>
    %20 = vector.multi_reduction <add>, %19, %cst_14 [1] : vector<512x32xf32> to vector<512xf32>
    %21 = vector.shape_cast %20 : vector<512xf32> to vector<512x1xf32>
    %c0_15 = arith.constant 0 : index
    %c0_16 = arith.constant 0 : index
    %22 = vector.load %arg7[%c0_15, %c0_16] : memref<1x1xf32, #tpu.memory_space<vmem>>, vector<1x1xf32>
    %23 = vector.broadcast %22 : vector<1x1xf32> to vector<512x1xf32>
    %24 = arith.addf %21, %23 : vector<512x1xf32>
    %25 = arith.negf %24 : vector<512x1xf32>
    %26 = math.exp %25 : vector<512x1xf32>
    %cst_17 = arith.constant 1.000000e+00 : f32
    %27 = vector.broadcast %cst_17 : f32 to vector<512x1xf32>
    %28 = arith.addf %27, %26 : vector<512x1xf32>
    %29 = arith.divf %27, %28 : vector<512x1xf32>
    %c0_18 = arith.constant 0 : index
    %c0_19 = arith.constant 0 : index
    %30 = vector.load %arg8[%c0_18, %c0_19] : memref<512x1xf32, #tpu.memory_space<vmem>>, vector<512x1xf32>
    tpu.vector_store %arg8[%c0_18, %c0_19], %29 {strides = array<i32>} : memref<512x1xf32, #tpu.memory_space<vmem>>, vector<512x1xf32>,
    return
  }
  func.func @transform_0(%arg0: i32) -> (i32, i32) {
    %c0_i32 = arith.constant 0 : i32
    %c0_i32_0 = arith.constant 0 : i32
    return %arg0, %c0_i32 : i32, i32
  }
  func.func @transform_1(%arg0: i32) -> (i32, i32) {
    %c0_i32 = arith.constant 0 : i32
    %c0_i32_0 = arith.constant 0 : i32
    %c0_i32_1 = arith.constant 0 : i32
    return %c0_i32, %c0_i32_0 : i32, i32
  }
  func.func @transform_2(%arg0: i32) -> (i32, i32) {
    %c0_i32 = arith.constant 0 : i32
    %c0_i32_0 = arith.constant 0 : i32
    %c0_i32_1 = arith.constant 0 : i32
    return %c0_i32, %c0_i32_0 : i32, i32
  }
  func.func @transform_3(%arg0: i32) -> (i32, i32) {
    %c0_i32 = arith.constant 0 : i32
    %c0_i32_0 = arith.constant 0 : i32
    %c0_i32_1 = arith.constant 0 : i32
    return %c0_i32, %c0_i32_0 : i32, i32
  }
  func.func @transform_4(%arg0: i32) -> (i32, i32) {
    %c0_i32 = arith.constant 0 : i32
    %c0_i32_0 = arith.constant 0 : i32
    %c0_i32_1 = arith.constant 0 : i32
    return %c0_i32, %c0_i32_0 : i32, i32
  }
  func.func @transform_5(%arg0: i32) -> (i32, i32) {
    %c0_i32 = arith.constant 0 : i32
    %c0_i32_0 = arith.constant 0 : i32
    %c0_i32_1 = arith.constant 0 : i32
    return %c0_i32, %c0_i32_0 : i32, i32
  }
  func.func @transform_6(%arg0: i32) -> (i32, i32) {
    %c0_i32 = arith.constant 0 : i32
    %c0_i32_0 = arith.constant 0 : i32
    %c0_i32_1 = arith.constant 0 : i32
    return %c0_i32, %c0_i32_0 : i32, i32
  }
  func.func @transform_7(%arg0: i32) -> (i32, i32) {
    %c0_i32 = arith.constant 0 : i32
    %c0_i32_0 = arith.constant 0 : i32
    return %arg0, %c0_i32 : i32, i32
  }
}

</mosaic_0001>

<bundles_post_ra>
// kernel: tpu_custom_call.1
= control target key start
LH: loop header
LB: loop body
LE: loop exit
PB: predicated region body
PF: predicated region fallthrough
CT: control target
= control target key end

     0   :  { %s3129_s0 = inlined_call_operand.hbm [shape: f32[8,16], index: 0, kind: input, shape index: {}]   ;;  %s3130_s1 = inlined_call_operand.hbm [shape: bf16[16,32], index: 1, kind: input, shape index: {}]   ;;  %s3131_s2 = inlined_call_operand.vmem [shape: f32[1,32], index: 2, kind: input, shape index: {}]   ;;  %s3132_s3 = inlined_call_operand.hbm [shape: bf16[32,32], index: 3, kind: input, shape index: {}]   ;;  %s3133_s4 = inlined_call_operand.vmem [shape: f32[1,32], index: 4, kind: input, shape index: {}]   ;;  %s3134_s5 = inlined_call_operand.vmem [shape: f32[1,32], index: 5, kind: input, shape index: {}]   ;;  %s3135_s6 = inlined_call_operand.<no memory space> [shape: f32[1,1], index: 6, kind: input, shape index: {}]   ;;  %s3136_s7 = inlined_call_operand.vmem [shape: f32[8,1], index: 7, kind: output, shape index: {}]  }
   0x1   :  { %v12_v0 = vstv %s3135_s6 }
   0x2   :  { %13 = vst [vmem:[#allocation2] sm:$0x1] %v12_v0 }
   0x3   :  { %14 = vsyncpa [#allocation4], 0 }
   0x4   :  { %15 = vsyncpa [#allocation6], 0 }
   0x5   :  { %20 = vsyncadd [#allocation4], 8064  ;;  %s2634_s26 = smov [#allocation5]   ;;  %s2564_s30 = scalar_lea.hbm %s3130_s1, 128 }
   0x6   :  { %s33_s27 = sshll.u32 %s2634_s26, 4  ;;  %p2565_p0 = scmp.ne.s32.totalorder %s3130_s1, %s2564_s30  ;;  %s34_s27 = int_to_ptr.vmem [resolvable:$true] %s33_s27 }
   0x7   :  { %p2568_p1 = scmp.lt.u32.totalorder %s2564_s30, %s3130_s1 }
   0x9   :  { %p2570_p2 = pnand %p2568_p1, %p2565_p0 }
   0xb   :  { %2573 = shalt.err (!%p2570_p2)
}
   0xc   :  { %s2574_s6 = scalar_lea.vmem %s34_s27, 128  ;;  %p2579_p4 = scmp.lt.s32.totalorder %s34_s27, %s34_s27 }
   0xd   :  { %p2575_p3 = scmp.ne.s32.totalorder %s34_s27, %s2574_s6  ;;  %p2580_p5 = scmp.lt.s32.totalorder %s2574_s6, %s2574_s6 }
   0xf   :  { %p2581_p6 = por %p2580_p5, %p2579_p4 }
  0x11   :  { %p2582_p7 = pnand %p2581_p6, %p2575_p3 }
  0x13   :  { %2585 = shalt.err (!%p2582_p7)
}
  0x14   :  { %s2635_s12 = smov 64   ;;  %s2636_s13 = smov 4  }
  0x15   :  { %39 = dma.hbm_to_vmem [thread:$0]  %s3130_s1, 128, %s34_s27, [#allocation6], %s2635_s12, %s2635_s12, %s2636_s13  }
  0x16   :  { %s2637_s16 = smov [#allocation3]   ;;  %s2586_s20 = scalar_lea.hbm %s3129_s0, 128 }
  0x17   :  { %s21_s17 = sshll.u32 %s2637_s16, 4  ;;  %p2587_p8 = scmp.ne.s32.totalorder %s3129_s0, %s2586_s20  ;;  %s22_s17 = int_to_ptr.vmem [resolvable:$true] %s21_s17 }
  0x18   :  { %p2590_p9 = scmp.lt.u32.totalorder %s2586_s20, %s3129_s0 }
  0x1a   :  { %p2592_p10 = pnand %p2590_p9, %p2587_p8 }
  0x1c   :  { %2595 = shalt.err (!%p2592_p10)
}
  0x1d   :  { %s2596_s25 = scalar_lea.vmem %s22_s17, 128  ;;  %s2600_s1 = scalar_lea.vmem %s22_s17, 8192 }
  0x1e   :  { %p2597_p11 = scmp.ne.s32.totalorder %s22_s17, %s2596_s25  ;;  %p2601_p12 = scmp.lt.s32.totalorder %s22_s17, %s22_s17 }
  0x1f   :  { %p2602_p13 = scmp.lt.s32.totalorder %s2600_s1, %s2596_s25 }
  0x21   :  { %p2603_p0 = por %p2602_p13, %p2601_p12 }
  0x23   :  { %p2604_p1 = pnand %p2603_p0, %p2597_p11 }
  0x25   :  { %2607 = shalt.err (!%p2604_p1)
}
  0x26   :  { %s2638_s26 = smov 128   ;;  %s2639_s27 = smov 8  }
  0x27   :  { %27 = dma.hbm_to_vmem [thread:$0]  %s3129_s0, 128, %s22_s17, [#allocation4], %s2638_s26, %s2638_s26, %s2639_s27  }
  0x28   :  { %s2640_s30 = smov [#allocation7]   ;;  %s2608_s11 = scalar_lea.hbm %s3132_s3, 256 }
  0x29   :  { %s47_s8 = sshll.u32 %s2640_s30, 4  ;;  %p2609_p2 = scmp.ne.s32.totalorder %s3132_s3, %s2608_s11  ;;  %s48_s8 = int_to_ptr.vmem [resolvable:$true] %s47_s8 }
  0x2a   :  { %p2612_p3 = scmp.lt.u32.totalorder %s2608_s11, %s3132_s3 }
  0x2c   :  { %p2614_p4 = pnand %p2612_p3, %p2609_p2 }
  0x2e   :  { %2617 = shalt.err (!%p2614_p4)
}
  0x2f   :  { %s2618_s18 = scalar_lea.vmem %s48_s8, 256  ;;  %p2623_p6 = scmp.lt.s32.totalorder %s48_s8, %s48_s8 }
  0x30   :  { %p2619_p5 = scmp.ne.s32.totalorder %s48_s8, %s2618_s18  ;;  %p2624_p7 = scmp.lt.s32.totalorder %s2618_s18, %s2618_s18 }
  0x32   :  { %p2625_p8 = por %p2624_p7, %p2623_p6 }
  0x34   :  { %p2626_p9 = pnand %p2625_p8, %p2619_p5 }
  0x36   :  { %2629 = shalt.err (!%p2626_p9)
}
  0x37   :  { %53 = dma.hbm_to_vmem [thread:$0]  %s3132_s3, 256, %s48_s8, [#allocation6], %s2635_s12, %s2635_s12, %s2636_s13  }
  0x38   :  { %2630 = dma.done.wait [#allocation4], 8192  }
  0x39   :  { %2631 = vsyncadd [#allocation4], 4294959104 }
  0x3a   :  { %2632 = dma.done.wait [#allocation6], 384  }
  0x3b   :  { %2633 = vsyncadd [#allocation6], 4294966912  ;;  %v2304_v1 = vld [vmem:[#allocation5] sm:$0xff]   ;;  %v71_v3 = vld [vmem:[#allocation3 + $0x8] sm:$0xff]  ;;  %vm181_vm0 = vcmask 130048   ;;  %vm686_vm1 = vcmask 261120  }
  0x3c   :  { %v70_v2 = vld [vmem:[#allocation3] sm:$0xff]  ;;  %v72_v4 = vld [vmem:[#allocation3 + $0x10] sm:$0xff]  ;;  %2163 = vmatprep.subr.bf16.mxu0 %v2304_v1  ;;  %v73_v6 = vld [vmem:[#allocation3 + $0x18] sm:$0xff]  ;;  %vm1854_vm2 = vcmask 7168  }
  0x3d   :  { %v134_v5 = vpack.c.bf16 %v71_v3, %v70_v2  ;;  %v74_v7 = vld [vmem:[#allocation3 + $0x20] sm:$0xff]  ;;  %v75_v8 = vld [vmem:[#allocation3 + $0x28] sm:$0xff]  ;;  %2164 = vmatpush3.bf16.msra.mxu0 %v2304_v1  ;;  %v135_v9 = vpack.c.bf16 %v73_v6, %v72_v4  ;;  %v76_v11 = vld [vmem:[#allocation3 + $0x30] sm:$0xff] }
  0x3e   :  { %v136_v10 = vpack.c.bf16 %v75_v8, %v74_v7  ;;  %v77_v12 = vld [vmem:[#allocation3 + $0x38] sm:$0xff]  ;;  %v78_v13 = vld [vmem:[#allocation3 + $0x40] sm:$0xff]  ;;  %v79_v14 = vld [vmem:[#allocation3 + $0x48] sm:$0xff] }
  0x3f   :  { %2165 = vmatprep.mubr.msk.bf16.mxu0 %vm181_vm0, %v134_v5  ;;  %v137_v15 = vpack.c.bf16 %v77_v12, %v76_v11  ;;  %v138_v16 = vpack.c.bf16 %v79_v14, %v78_v13  ;;  %v80_v17 = vld [vmem:[#allocation3 + $0x50] sm:$0xff]  ;;  %v81_v18 = vld [vmem:[#allocation3 + $0x58] sm:$0xff]  ;;  %v82_v19 = vld [vmem:[#allocation3 + $0x60] sm:$0xff] }
  0x40   :  { %2166 = vmatmul.mubr.msk.bf16.vlgmr.msra.gmra.mrb[0].mxu0 %vm181_vm0, %v135_v9  ;;  %v83_v20 = vld [vmem:[#allocation3 + $0x68] sm:$0xff]  ;;  %v139_v21 = vpack.c.bf16 %v81_v18, %v80_v17  ;;  %v84_v23 = vld [vmem:[#allocation3 + $0x70] sm:$0xff]  ;;  %v85_v24 = vld [vmem:[#allocation3 + $0x78] sm:$0xff] }
  0x41   :  { %2169 = vmatprep.mubr.msk.bf16.mxu0 %vm181_vm0, %v136_v10  ;;  %v140_v22 = vpack.c.bf16 %v83_v20, %v82_v19  ;;  %v86_v25 = vld [vmem:[#allocation3 + $0x80] sm:$0xff]  ;;  %v87_v26 = vld [vmem:[#allocation3 + $0x88] sm:$0xff]  ;;  %v141_v27 = vpack.c.bf16 %v85_v24, %v84_v23  ;;  %v88_v29 = vld [vmem:[#allocation3 + $0x90] sm:$0xff] }
  0x42   :  { %v142_v28 = vpack.c.bf16 %v87_v26, %v86_v25  ;;  %v89_v30 = vld [vmem:[#allocation3 + $0x98] sm:$0xff]  ;;  %v90_v31 = vld [vmem:[#allocation3 + $0xa0] sm:$0xff]  ;;  %v91_v32 = vld [vmem:[#allocation3 + $0xa8] sm:$0xff] }
  0x43   :  { %v143_v33 = vpack.c.bf16 %v89_v30, %v88_v29  ;;  %v144_v34 = vpack.c.bf16 %v91_v32, %v90_v31  ;;  %v92_v35 = vld [vmem:[#allocation3 + $0xb0] sm:$0xff]  ;;  %v93_v36 = vld [vmem:[#allocation3 + $0xb8] sm:$0xff]  ;;  %v94_v37 = vld [vmem:[#allocation3 + $0xc0] sm:$0xff] }
  0x44   :  { %v95_v38 = vld [vmem:[#allocation3 + $0xc8] sm:$0xff]  ;;  %v145_v39 = vpack.c.bf16 %v93_v36, %v92_v35  ;;  %v96_v41 = vld [vmem:[#allocation3 + $0xd0] sm:$0xff]  ;;  %v97_v42 = vld [vmem:[#allocation3 + $0xd8] sm:$0xff] }
  0x45   :  { %v146_v40 = vpack.c.bf16 %v95_v38, %v94_v37  ;;  %v98_v43 = vld [vmem:[#allocation3 + $0xe0] sm:$0xff]  ;;  %v99_v44 = vld [vmem:[#allocation3 + $0xe8] sm:$0xff]  ;;  %v147_v45 = vpack.c.bf16 %v97_v42, %v96_v41  ;;  %v100_v47 = vld [vmem:[#allocation3 + $0xf0] sm:$0xff] }
  0x46   :  { %v148_v46 = vpack.c.bf16 %v99_v44, %v98_v43  ;;  %v101_v48 = vld [vmem:[#allocation3 + $0xf8] sm:$0xff]  ;;  %v102_v49 = vld [vmem:[#allocation3 + $0x100] sm:$0xff]  ;;  %v103_v50 = vld [vmem:[#allocation3 + $0x108] sm:$0xff] }
  0x47   :  { %v149_v51 = vpack.c.bf16 %v101_v48, %v100_v47  ;;  %v150_v52 = vpack.c.bf16 %v103_v50, %v102_v49  ;;  %v104_v53 = vld [vmem:[#allocation3 + $0x110] sm:$0xff]  ;;  %v105_v54 = vld [vmem:[#allocation3 + $0x118] sm:$0xff]  ;;  %v106_v55 = vld [vmem:[#allocation3 + $0x120] sm:$0xff] }
  0x48   :  { %2170 = vmatmul.mubr.msk.bf16.gmra.mrb[4].mxu0 %vm181_vm0, %v137_v15  ;;  %v107_v56 = vld [vmem:[#allocation3 + $0x128] sm:$0xff]  ;;  %v151_v57 = vpack.c.bf16 %v105_v54, %v104_v53  ;;  %v108_v59 = vld [vmem:[#allocation3 + $0x130] sm:$0xff]  ;;  %v109_v60 = vld [vmem:[#allocation3 + $0x138] sm:$0xff] }
  0x49   :  { %2173 = vmatprep.mubr.msk.bf16.mxu0 %vm181_vm0, %v138_v16  ;;  %v152_v58 = vpack.c.bf16 %v107_v56, %v106_v55  ;;  %v110_v61 = vld [vmem:[#allocation3 + $0x140] sm:$0xff]  ;;  %v111_v62 = vld [vmem:[#allocation3 + $0x148] sm:$0xff]  ;;  %v153_v63 = vpack.c.bf16 %v109_v60, %v108_v59  ;;  %v112_v1 = vld [vmem:[#allocation3 + $0x150] sm:$0xff] }
  0x4a   :  { %v154_v0 = vpack.c.bf16 %v111_v62, %v110_v61  ;;  %v113_v2 = vld [vmem:[#allocation3 + $0x158] sm:$0xff]  ;;  %v114_v3 = vld [vmem:[#allocation3 + $0x160] sm:$0xff]  ;;  %v115_v4 = vld [vmem:[#allocation3 + $0x168] sm:$0xff] }
  0x4b   :  { %v155_v5 = vpack.c.bf16 %v113_v2, %v112_v1  ;;  %v156_v6 = vpack.c.bf16 %v115_v4, %v114_v3  ;;  %v116_v7 = vld [vmem:[#allocation3 + $0x170] sm:$0xff]  ;;  %v117_v8 = vld [vmem:[#allocation3 + $0x178] sm:$0xff]  ;;  %v118_v9 = vld [vmem:[#allocation3 + $0x180] sm:$0xff] }
  0x4c   :  { %v119_v10 = vld [vmem:[#allocation3 + $0x188] sm:$0xff]  ;;  %v157_v11 = vpack.c.bf16 %v117_v8, %v116_v7  ;;  %v2306_v14 = vld [vmem:[#allocation7 + $0x8] sm:$0xff]   ;;  %v121_v16 = vld [vmem:[#allocation3 + $0x198] sm:$0xff] }
  0x4d   :  { %v2305_v12 = vld [vmem:[#allocation7] sm:$0xff]   ;;  %v158_v13 = vpack.c.bf16 %v119_v10, %v118_v9  ;;  %v120_v15 = vld [vmem:[#allocation3 + $0x190] sm:$0xff]  ;;  %v122_v17 = vld [vmem:[#allocation3 + $0x1a0] sm:$0xff] }
  0x4e   :  { %2229 = vmatprep.subr.bf16.mxu1 %v2305_v12  ;;  %v123_v18 = vld [vmem:[#allocation3 + $0x1a8] sm:$0xff]  ;;  %v159_v19 = vpack.c.bf16 %v121_v16, %v120_v15  ;;  %v126_v23 = vld [vmem:[#allocation3 + $0x1c0] sm:$0xff]  ;;  %v2761_v36 = vld [vmem:[%s3131_s2] ss:$0 sm:$0xff] }
  0x4f   :  { %2230 = vmatpush3.bf16.msra.mxu1 %v2305_v12  ;;  %v160_v20 = vpack.c.bf16 %v123_v18, %v122_v17  ;;  %v127_v24 = vld [vmem:[#allocation3 + $0x1c8] sm:$0xff]  ;;  %v130_v29 = vld [vmem:[#allocation3 + $0x1e0] sm:$0xff] }
  0x50   :  { %2174 = vmatmul.mubr.msk.bf16.gmra.mrb[8].mxu0 %vm181_vm0, %v139_v21  ;;  %2231 = vmatprep.subr.bf16.mxu1 %v2306_v14  ;;  %v124_v21 = vld [vmem:[#allocation3 + $0x1b0] sm:$0xff]  ;;  %v162_v26 = vpack.c.bf16 %v127_v24, %v126_v23  ;;  %v131_v30 = vld [vmem:[#allocation3 + $0x1e8] sm:$0xff] }
  0x51   :  { %2177 = vmatprep.mubr.msk.bf16.mxu0 %vm181_vm0, %v140_v22  ;;  %v125_v22 = vld [vmem:[#allocation3 + $0x1b8] sm:$0xff]  ;;  %v164_v32 = vpack.c.bf16 %v131_v30, %v130_v29 }
  0x52   :  { %v161_v25 = vpack.c.bf16 %v125_v22, %v124_v21 }
  0x53   :  { %2232 = vmatpush3.bf16.msra.mxu1 %v2306_v14 }
  0x58   :  { %2178 = vmatmul.mubr.msk.bf16.gmra.mrb[12].mxu0 %vm181_vm0, %v141_v27  ;;  %v128_v27 = vld [vmem:[#allocation3 + $0x1d0] sm:$0xff] }
  0x59   :  { %2181 = vmatprep.mubr.msk.bf16.mxu0 %vm181_vm0, %v142_v28  ;;  %v129_v28 = vld [vmem:[#allocation3 + $0x1d8] sm:$0xff] }
  0x5a   :  { %v163_v31 = vpack.c.bf16 %v129_v28, %v128_v27 }
  0x60   :  { %2182 = vmatmul.mubr.msk.bf16.gmra.mrb[16].mxu0 %vm181_vm0, %v143_v33  ;;  %v132_v33 = vld [vmem:[#allocation3 + $0x1f0] sm:$0xff] }
  0x61   :  { %2185 = vmatprep.mubr.msk.bf16.mxu0 %vm181_vm0, %v144_v34  ;;  %v133_v34 = vld [vmem:[#allocation3 + $0x1f8] sm:$0xff] }
  0x62   :  { %v165_v35 = vpack.c.bf16 %v133_v34, %v132_v33 }
  0x68   :  { %2186 = vmatmul.mubr.msk.bf16.gmra.mrb[20].mxu0 %vm181_vm0, %v145_v39 }
  0x69   :  { %2189 = vmatprep.mubr.msk.bf16.mxu0 %vm181_vm0, %v146_v40 }
  0x70   :  { %2190 = vmatmul.mubr.msk.bf16.gmra.mrb[24].mxu0 %vm181_vm0, %v147_v45 }
  0x71   :  { %2193 = vmatprep.mubr.msk.bf16.mxu0 %vm181_vm0, %v148_v46 }
  0x78   :  { %2194 = vmatmul.mubr.msk.bf16.gmra.mrb[28].mxu0 %vm181_vm0, %v149_v51 }
  0x79   :  { %2197 = vmatprep.mubr.msk.bf16.mxu0 %vm181_vm0, %v150_v52 }
  0x80   :  { %2198 = vmatmul.mubr.msk.bf16.gmra.mrb[32].mxu0 %vm181_vm0, %v151_v57 }
  0x81   :  { %2201 = vmatprep.mubr.msk.bf16.mxu0 %vm181_vm0, %v152_v58 }
  0x88   :  { %2202 = vmatmul.mubr.msk.bf16.gmra.mrb[36].mxu0 %vm181_vm0, %v153_v63 }
  0x89   :  { %2205 = vmatprep.mubr.msk.bf16.mxu0 %vm181_vm0, %v154_v0 }
  0x90   :  { %2206 = vmatmul.mubr.msk.bf16.gmra.mrb[40].mxu0 %vm181_vm0, %v155_v5 }
  0x91   :  { %2209 = vmatprep.mubr.msk.bf16.mxu0 %vm181_vm0, %v156_v6 }
  0x98   :  { %2210 = vmatmul.mubr.msk.bf16.gmra.mrb[44].mxu0 %vm181_vm0, %v157_v11 }
  0x99   :  { %2213 = vmatprep.mubr.msk.bf16.mxu0 %vm181_vm0, %v158_v13 }
  0xa0   :  { %2214 = vmatmul.mubr.msk.bf16.gmra.mrb[48].mxu0 %vm181_vm0, %v159_v19 }
  0xa1   :  { %2217 = vmatprep.mubr.msk.bf16.mxu0 %vm181_vm0, %v160_v20 }
  0xa8   :  { %2218 = vmatmul.mubr.msk.bf16.gmra.mrb[52].mxu0 %vm181_vm0, %v161_v25 }
  0xa9   :  { %2221 = vmatprep.mubr.msk.bf16.mxu0 %vm181_vm0, %v162_v26 }
  0xb0   :  { %2222 = vmatmul.mubr.msk.bf16.gmra.mrb[56].mxu0 %vm181_vm0, %v163_v31 }
  0xb1   :  { %2225 = vmatprep.mubr.msk.bf16.mxu0 %vm181_vm0, %v164_v32 }
  0xb8   :  { %2226 = vmatmul.mubr.msk.bf16.gmra.mrb[60].mxu0 %vm181_vm0, %v165_v35 }
 0x113   :  { %v2167_v37 = vpop.f32.mrb[0].mxu0 }
 0x114   :  { %v321_v38 = vadd.f32 %v2167_v37, %v2761_v36  ;;  %v312_v39 = vpop.f32.mrb[1].mxu0 }
 0x115   :  { %v313_v40 = vadd.f32 %v2761_v36, %v312_v39  ;;  %v2168_v41 = vpop.f32.mrb[2].mxu0 }
 0x116   :  { %v324_v42 = vadd.f32 %v2168_v41, %v2761_v36  ;;  %v315_v43 = vpop.f32.mrb[3].mxu0  ;;  %v569_v45 = vmax.f32 %v321_v38, 0.0 }
 0x117   :  { %v316_v44 = vadd.f32 %v2761_v36, %v315_v43  ;;  %v567_v47 = vmax.f32 %v313_v40, 0.0 }
 0x118   :  { %v570_v46 = vmax.f32 %v324_v42, 0.0 }
 0x119   :  { %v568_v48 = vmax.f32 %v316_v44, 0.0 }
 0x11a   :  { %v632_v49 = vpack.c.bf16 %v570_v46, %v569_v45 }
 0x11b   :  { %v2171_v50 = vpop.f32.mrb[4].mxu0  ;;  %v631_v51 = vpack.c.bf16 %v568_v48, %v567_v47 }
 0x11c   :  { %v337_v52 = vadd.f32 %v2171_v50, %v2761_v36  ;;  %v328_v53 = vpop.f32.mrb[5].mxu0 }
 0x11d   :  { %v329_v54 = vadd.f32 %v2761_v36, %v328_v53  ;;  %v2172_v55 = vpop.f32.mrb[6].mxu0  ;;  %2233 = vmatprep.mubr.msk.bf16.mxu1 %vm686_vm1, %v631_v51 }
 0x11e   :  { %v340_v56 = vadd.f32 %v2172_v55, %v2761_v36  ;;  %v331_v57 = vpop.f32.mrb[7].mxu0  ;;  %2234 = vmatmul.mubr.msk.bf16.vlgmr.msra.gmra.mrb[0].mxu1 %vm686_vm1, %v632_v49  ;;  %v573_v59 = vmax.f32 %v337_v52, 0.0 }
 0x11f   :  { %v332_v58 = vadd.f32 %v2761_v36, %v331_v57  ;;  %v571_v61 = vmax.f32 %v329_v54, 0.0 }
 0x120   :  { %v574_v60 = vmax.f32 %v340_v56, 0.0 }
 0x121   :  { %v572_v62 = vmax.f32 %v332_v58, 0.0 }
 0x122   :  { %v634_v63 = vpack.c.bf16 %v574_v60, %v573_v59 }
 0x123   :  { %v633_v0 = vpack.c.bf16 %v572_v62, %v571_v61  ;;  %v2175_v1 = vpop.f32.mrb[8].mxu0 }
 0x124   :  { %v353_v2 = vadd.f32 %v2175_v1, %v2761_v36  ;;  %v344_v3 = vpop.f32.mrb[9].mxu0 }
 0x125   :  { %v345_v4 = vadd.f32 %v2761_v36, %v344_v3  ;;  %v2176_v5 = vpop.f32.mrb[10].mxu0  ;;  %2237 = vmatprep.mubr.msk.bf16.mxu1 %vm686_vm1, %v633_v0 }
 0x126   :  { %v356_v6 = vadd.f32 %v2176_v5, %v2761_v36  ;;  %v347_v7 = vpop.f32.mrb[11].mxu0  ;;  %2238 = vmatmul.mubr.msk.bf16.gmra.mrb[4].mxu1 %vm686_vm1, %v634_v63  ;;  %v577_v9 = vmax.f32 %v353_v2, 0.0 }
 0x127   :  { %v348_v8 = vadd.f32 %v2761_v36, %v347_v7  ;;  %v575_v11 = vmax.f32 %v345_v4, 0.0 }
 0x128   :  { %v578_v10 = vmax.f32 %v356_v6, 0.0 }
 0x129   :  { %v576_v12 = vmax.f32 %v348_v8, 0.0 }
 0x12a   :  { %v636_v13 = vpack.c.bf16 %v578_v10, %v577_v9 }
 0x12b   :  { %v635_v14 = vpack.c.bf16 %v576_v12, %v575_v11  ;;  %v2179_v15 = vpop.f32.mrb[12].mxu0 }
 0x12c   :  { %v369_v16 = vadd.f32 %v2179_v15, %v2761_v36  ;;  %v360_v17 = vpop.f32.mrb[13].mxu0 }
 0x12d   :  { %v361_v18 = vadd.f32 %v2761_v36, %v360_v17  ;;  %v2180_v19 = vpop.f32.mrb[14].mxu0  ;;  %2241 = vmatprep.mubr.msk.bf16.mxu1 %vm686_vm1, %v635_v14 }
 0x12e   :  { %v372_v20 = vadd.f32 %v2180_v19, %v2761_v36  ;;  %v363_v21 = vpop.f32.mrb[15].mxu0  ;;  %2242 = vmatmul.mubr.msk.bf16.gmra.mrb[8].mxu1 %vm686_vm1, %v636_v13  ;;  %v581_v23 = vmax.f32 %v369_v16, 0.0 }
 0x12f   :  { %v364_v22 = vadd.f32 %v2761_v36, %v363_v21  ;;  %v579_v25 = vmax.f32 %v361_v18, 0.0 }
 0x130   :  { %v582_v24 = vmax.f32 %v372_v20, 0.0 }
 0x131   :  { %v580_v26 = vmax.f32 %v364_v22, 0.0 }
 0x132   :  { %v638_v27 = vpack.c.bf16 %v582_v24, %v581_v23 }
 0x133   :  { %v637_v28 = vpack.c.bf16 %v580_v26, %v579_v25  ;;  %v2183_v29 = vpop.f32.mrb[16].mxu0 }
 0x134   :  { %v385_v30 = vadd.f32 %v2183_v29, %v2761_v36  ;;  %v376_v31 = vpop.f32.mrb[17].mxu0 }
 0x135   :  { %v377_v32 = vadd.f32 %v2761_v36, %v376_v31  ;;  %v2184_v33 = vpop.f32.mrb[18].mxu0  ;;  %2245 = vmatprep.mubr.msk.bf16.mxu1 %vm686_vm1, %v637_v28 }
 0x136   :  { %v388_v34 = vadd.f32 %v2184_v33, %v2761_v36  ;;  %v379_v35 = vpop.f32.mrb[19].mxu0  ;;  %2246 = vmatmul.mubr.msk.bf16.gmra.mrb[12].mxu1 %vm686_vm1, %v638_v27  ;;  %v585_v38 = vmax.f32 %v385_v30, 0.0 }
 0x137   :  { %v380_v37 = vadd.f32 %v2761_v36, %v379_v35  ;;  %v583_v40 = vmax.f32 %v377_v32, 0.0 }
 0x138   :  { %v586_v39 = vmax.f32 %v388_v34, 0.0 }
 0x139   :  { %v584_v41 = vmax.f32 %v380_v37, 0.0 }
 0x13a   :  { %v640_v42 = vpack.c.bf16 %v586_v39, %v585_v38 }
 0x13b   :  { %v639_v43 = vpack.c.bf16 %v584_v41, %v583_v40  ;;  %v2187_v44 = vpop.f32.mrb[20].mxu0 }
 0x13c   :  { %v401_v45 = vadd.f32 %v2187_v44, %v2761_v36  ;;  %v392_v46 = vpop.f32.mrb[21].mxu0 }
 0x13d   :  { %v393_v47 = vadd.f32 %v2761_v36, %v392_v46  ;;  %v2188_v48 = vpop.f32.mrb[22].mxu0  ;;  %2249 = vmatprep.mubr.msk.bf16.mxu1 %vm686_vm1, %v639_v43 }
 0x13e   :  { %v404_v49 = vadd.f32 %v2188_v48, %v2761_v36  ;;  %v395_v50 = vpop.f32.mrb[23].mxu0  ;;  %2250 = vmatmul.mubr.msk.bf16.gmra.mrb[16].mxu1 %vm686_vm1, %v640_v42  ;;  %v589_v52 = vmax.f32 %v401_v45, 0.0 }
 0x13f   :  { %v396_v51 = vadd.f32 %v2761_v36, %v395_v50  ;;  %v587_v54 = vmax.f32 %v393_v47, 0.0 }
 0x140   :  { %v590_v53 = vmax.f32 %v404_v49, 0.0 }
 0x141   :  { %v588_v55 = vmax.f32 %v396_v51, 0.0 }
 0x142   :  { %v642_v56 = vpack.c.bf16 %v590_v53, %v589_v52 }
 0x143   :  { %v641_v57 = vpack.c.bf16 %v588_v55, %v587_v54  ;;  %v2191_v58 = vpop.f32.mrb[24].mxu0 }
 0x144   :  { %v417_v59 = vadd.f32 %v2191_v58, %v2761_v36  ;;  %v408_v60 = vpop.f32.mrb[25].mxu0 }
 0x145   :  { %v409_v61 = vadd.f32 %v2761_v36, %v408_v60  ;;  %v2192_v62 = vpop.f32.mrb[26].mxu0  ;;  %2253 = vmatprep.mubr.msk.bf16.mxu1 %vm686_vm1, %v641_v57 }
 0x146   :  { %v420_v63 = vadd.f32 %v2192_v62, %v2761_v36  ;;  %v411_v0 = vpop.f32.mrb[27].mxu0  ;;  %2254 = vmatmul.mubr.msk.bf16.gmra.mrb[20].mxu1 %vm686_vm1, %v642_v56  ;;  %v593_v2 = vmax.f32 %v417_v59, 0.0 }
 0x147   :  { %v412_v1 = vadd.f32 %v2761_v36, %v411_v0  ;;  %v591_v4 = vmax.f32 %v409_v61, 0.0 }
 0x148   :  { %v594_v3 = vmax.f32 %v420_v63, 0.0 }
 0x149   :  { %v592_v5 = vmax.f32 %v412_v1, 0.0 }
 0x14a   :  { %v644_v6 = vpack.c.bf16 %v594_v3, %v593_v2 }
 0x14b   :  { %v643_v7 = vpack.c.bf16 %v592_v5, %v591_v4  ;;  %v2195_v8 = vpop.f32.mrb[28].mxu0 }
 0x14c   :  { %v433_v9 = vadd.f32 %v2195_v8, %v2761_v36  ;;  %v424_v10 = vpop.f32.mrb[29].mxu0 }
 0x14d   :  { %v425_v11 = vadd.f32 %v2761_v36, %v424_v10  ;;  %v2196_v12 = vpop.f32.mrb[30].mxu0  ;;  %2257 = vmatprep.mubr.msk.bf16.mxu1 %vm686_vm1, %v643_v7 }
 0x14e   :  { %v436_v13 = vadd.f32 %v2196_v12, %v2761_v36  ;;  %v427_v14 = vpop.f32.mrb[31].mxu0  ;;  %2258 = vmatmul.mubr.msk.bf16.gmra.mrb[24].mxu1 %vm686_vm1, %v644_v6  ;;  %v597_v16 = vmax.f32 %v433_v9, 0.0 }
 0x14f   :  { %v428_v15 = vadd.f32 %v2761_v36, %v427_v14  ;;  %v595_v18 = vmax.f32 %v425_v11, 0.0 }
 0x150   :  { %v598_v17 = vmax.f32 %v436_v13, 0.0 }
 0x151   :  { %v596_v19 = vmax.f32 %v428_v15, 0.0 }
 0x152   :  { %v646_v20 = vpack.c.bf16 %v598_v17, %v597_v16 }
 0x153   :  { %v645_v21 = vpack.c.bf16 %v596_v19, %v595_v18  ;;  %v2199_v22 = vpop.f32.mrb[32].mxu0 }
 0x154   :  { %v449_v23 = vadd.f32 %v2199_v22, %v2761_v36  ;;  %v440_v24 = vpop.f32.mrb[33].mxu0 }
 0x155   :  { %v441_v25 = vadd.f32 %v2761_v36, %v440_v24  ;;  %v2200_v26 = vpop.f32.mrb[34].mxu0  ;;  %2261 = vmatprep.mubr.msk.bf16.mxu1 %vm686_vm1, %v645_v21 }
 0x156   :  { %v452_v27 = vadd.f32 %v2200_v26, %v2761_v36  ;;  %v443_v28 = vpop.f32.mrb[35].mxu0  ;;  %2262 = vmatmul.mubr.msk.bf16.gmra.mrb[28].mxu1 %vm686_vm1, %v646_v20  ;;  %v601_v30 = vmax.f32 %v449_v23, 0.0 }
 0x157   :  { %v444_v29 = vadd.f32 %v2761_v36, %v443_v28  ;;  %v599_v32 = vmax.f32 %v441_v25, 0.0 }
 0x158   :  { %v602_v31 = vmax.f32 %v452_v27, 0.0 }
 0x159   :  { %v600_v33 = vmax.f32 %v444_v29, 0.0 }
 0x15a   :  { %v648_v34 = vpack.c.bf16 %v602_v31, %v601_v30 }
 0x15b   :  { %v647_v35 = vpack.c.bf16 %v600_v33, %v599_v32  ;;  %v2203_v37 = vpop.f32.mrb[36].mxu0 }
 0x15c   :  { %v465_v38 = vadd.f32 %v2203_v37, %v2761_v36  ;;  %v456_v39 = vpop.f32.mrb[37].mxu0 }
 0x15d   :  { %v457_v40 = vadd.f32 %v2761_v36, %v456_v39  ;;  %v2204_v41 = vpop.f32.mrb[38].mxu0  ;;  %2265 = vmatprep.mubr.msk.bf16.mxu1 %vm686_vm1, %v647_v35 }
 0x15e   :  { %v468_v42 = vadd.f32 %v2204_v41, %v2761_v36  ;;  %v459_v43 = vpop.f32.mrb[39].mxu0  ;;  %2266 = vmatmul.mubr.msk.bf16.gmra.mrb[32].mxu1 %vm686_vm1, %v648_v34  ;;  %v605_v45 = vmax.f32 %v465_v38, 0.0 }
 0x15f   :  { %v460_v44 = vadd.f32 %v2761_v36, %v459_v43  ;;  %v603_v47 = vmax.f32 %v457_v40, 0.0 }
 0x160   :  { %v606_v46 = vmax.f32 %v468_v42, 0.0 }
 0x161   :  { %v604_v48 = vmax.f32 %v460_v44, 0.0 }
 0x162   :  { %v650_v49 = vpack.c.bf16 %v606_v46, %v605_v45 }
 0x163   :  { %v649_v50 = vpack.c.bf16 %v604_v48, %v603_v47  ;;  %v2207_v51 = vpop.f32.mrb[40].mxu0 }
 0x164   :  { %v481_v52 = vadd.f32 %v2207_v51, %v2761_v36  ;;  %v472_v53 = vpop.f32.mrb[41].mxu0 }
 0x165   :  { %v473_v54 = vadd.f32 %v2761_v36, %v472_v53  ;;  %v2208_v55 = vpop.f32.mrb[42].mxu0  ;;  %2269 = vmatprep.mubr.msk.bf16.mxu1 %vm686_vm1, %v649_v50 }
 0x166   :  { %v484_v56 = vadd.f32 %v2208_v55, %v2761_v36  ;;  %v475_v57 = vpop.f32.mrb[43].mxu0  ;;  %2270 = vmatmul.mubr.msk.bf16.gmra.mrb[36].mxu1 %vm686_vm1, %v650_v49  ;;  %v609_v59 = vmax.f32 %v481_v52, 0.0 }
 0x167   :  { %v476_v58 = vadd.f32 %v2761_v36, %v475_v57  ;;  %v607_v61 = vmax.f32 %v473_v54, 0.0 }
 0x168   :  { %v610_v60 = vmax.f32 %v484_v56, 0.0 }
 0x169   :  { %v608_v62 = vmax.f32 %v476_v58, 0.0 }
 0x16a   :  { %v652_v63 = vpack.c.bf16 %v610_v60, %v609_v59 }
 0x16b   :  { %v651_v0 = vpack.c.bf16 %v608_v62, %v607_v61  ;;  %v2211_v1 = vpop.f32.mrb[44].mxu0 }
 0x16c   :  { %v497_v2 = vadd.f32 %v2211_v1, %v2761_v36  ;;  %v488_v3 = vpop.f32.mrb[45].mxu0 }
 0x16d   :  { %v489_v4 = vadd.f32 %v2761_v36, %v488_v3  ;;  %v2212_v5 = vpop.f32.mrb[46].mxu0  ;;  %2273 = vmatprep.mubr.msk.bf16.mxu1 %vm686_vm1, %v651_v0 }
 0x16e   :  { %v500_v6 = vadd.f32 %v2212_v5, %v2761_v36  ;;  %v491_v7 = vpop.f32.mrb[47].mxu0  ;;  %2274 = vmatmul.mubr.msk.bf16.gmra.mrb[40].mxu1 %vm686_vm1, %v652_v63  ;;  %v613_v9 = vmax.f32 %v497_v2, 0.0 }
 0x16f   :  { %v492_v8 = vadd.f32 %v2761_v36, %v491_v7  ;;  %v611_v11 = vmax.f32 %v489_v4, 0.0 }
 0x170   :  { %v614_v10 = vmax.f32 %v500_v6, 0.0 }
 0x171   :  { %v612_v12 = vmax.f32 %v492_v8, 0.0  ;;  %v2862_v8 = vld [vmem:[%s3133_s4] ss:$0 sm:$0xff] }
 0x172   :  { %v654_v13 = vpack.c.bf16 %v614_v10, %v613_v9 }
 0x173   :  { %v653_v14 = vpack.c.bf16 %v612_v12, %v611_v11  ;;  %v2215_v15 = vpop.f32.mrb[48].mxu0 }
 0x174   :  { %v513_v16 = vadd.f32 %v2215_v15, %v2761_v36  ;;  %v504_v17 = vpop.f32.mrb[49].mxu0 }
 0x175   :  { %v505_v18 = vadd.f32 %v2761_v36, %v504_v17  ;;  %v2216_v19 = vpop.f32.mrb[50].mxu0  ;;  %2277 = vmatprep.mubr.msk.bf16.mxu1 %vm686_vm1, %v653_v14 }
 0x176   :  { %v516_v20 = vadd.f32 %v2216_v19, %v2761_v36  ;;  %v507_v21 = vpop.f32.mrb[51].mxu0  ;;  %2278 = vmatmul.mubr.msk.bf16.gmra.mrb[44].mxu1 %vm686_vm1, %v654_v13  ;;  %v617_v23 = vmax.f32 %v513_v16, 0.0  ;;  %v2869_v13 = vld [vmem:[%s3134_s5] ss:$0 sm:$0xff] }
 0x177   :  { %v508_v22 = vadd.f32 %v2761_v36, %v507_v21  ;;  %v615_v25 = vmax.f32 %v505_v18, 0.0 }
 0x178   :  { %v618_v24 = vmax.f32 %v516_v20, 0.0 }
 0x179   :  { %v616_v26 = vmax.f32 %v508_v22, 0.0 }
 0x17a   :  { %v656_v27 = vpack.c.bf16 %v618_v24, %v617_v23 }
 0x17b   :  { %v655_v28 = vpack.c.bf16 %v616_v26, %v615_v25  ;;  %v2219_v29 = vpop.f32.mrb[52].mxu0 }
 0x17c   :  { %v529_v30 = vadd.f32 %v2219_v29, %v2761_v36  ;;  %v520_v31 = vpop.f32.mrb[53].mxu0 }
 0x17d   :  { %v521_v32 = vadd.f32 %v2761_v36, %v520_v31  ;;  %v2220_v33 = vpop.f32.mrb[54].mxu0  ;;  %2281 = vmatprep.mubr.msk.bf16.mxu1 %vm686_vm1, %v655_v28 }
 0x17e   :  { %v532_v34 = vadd.f32 %v2220_v33, %v2761_v36  ;;  %v523_v35 = vpop.f32.mrb[55].mxu0  ;;  %2282 = vmatmul.mubr.msk.bf16.gmra.mrb[48].mxu1 %vm686_vm1, %v656_v27  ;;  %v621_v38 = vmax.f32 %v529_v30, 0.0 }
 0x17f   :  { %v524_v37 = vadd.f32 %v2761_v36, %v523_v35  ;;  %v619_v40 = vmax.f32 %v521_v32, 0.0 }
 0x180   :  { %v622_v39 = vmax.f32 %v532_v34, 0.0 }
 0x181   :  { %v620_v41 = vmax.f32 %v524_v37, 0.0 }
 0x182   :  { %v658_v42 = vpack.c.bf16 %v622_v39, %v621_v38 }
 0x183   :  { %v657_v43 = vpack.c.bf16 %v620_v41, %v619_v40  ;;  %v2223_v44 = vpop.f32.mrb[56].mxu0 }
 0x184   :  { %v545_v45 = vadd.f32 %v2223_v44, %v2761_v36  ;;  %v536_v46 = vpop.f32.mrb[57].mxu0 }
 0x185   :  { %v537_v47 = vadd.f32 %v2761_v36, %v536_v46  ;;  %v2224_v48 = vpop.f32.mrb[58].mxu0  ;;  %2285 = vmatprep.mubr.msk.bf16.mxu1 %vm686_vm1, %v657_v43 }
 0x186   :  { %v548_v49 = vadd.f32 %v2224_v48, %v2761_v36  ;;  %v539_v50 = vpop.f32.mrb[59].mxu0  ;;  %2286 = vmatmul.mubr.msk.bf16.gmra.mrb[52].mxu1 %vm686_vm1, %v658_v42  ;;  %v625_v52 = vmax.f32 %v545_v45, 0.0 }
 0x187   :  { %v540_v51 = vadd.f32 %v2761_v36, %v539_v50  ;;  %v623_v54 = vmax.f32 %v537_v47, 0.0 }
 0x188   :  { %v626_v53 = vmax.f32 %v548_v49, 0.0 }
 0x189   :  { %v624_v55 = vmax.f32 %v540_v51, 0.0 }
 0x18a   :  { %v660_v56 = vpack.c.bf16 %v626_v53, %v625_v52 }
 0x18b   :  { %v659_v57 = vpack.c.bf16 %v624_v55, %v623_v54  ;;  %v2227_v58 = vpop.f32.mrb[60].mxu0 }
 0x18c   :  { %v561_v59 = vadd.f32 %v2227_v58, %v2761_v36  ;;  %v552_v60 = vpop.f32.mrb[61].mxu0 }
 0x18d   :  { %v553_v61 = vadd.f32 %v2761_v36, %v552_v60  ;;  %v2228_v62 = vpop.f32.mrb[62].mxu0  ;;  %2289 = vmatprep.mubr.msk.bf16.mxu1 %vm686_vm1, %v659_v57 }
 0x18e   :  { %v564_v63 = vadd.f32 %v2228_v62, %v2761_v36  ;;  %v555_v0 = vpop.f32.mrb[63].mxu0  ;;  %2290 = vmatmul.mubr.msk.bf16.gmra.mrb[56].mxu1 %vm686_vm1, %v660_v56  ;;  %v629_v2 = vmax.f32 %v561_v59, 0.0 }
 0x18f   :  { %v556_v1 = vadd.f32 %v2761_v36, %v555_v0  ;;  %v627_v4 = vmax.f32 %v553_v61, 0.0 }
 0x190   :  { %v630_v3 = vmax.f32 %v564_v63, 0.0 }
 0x191   :  { %v628_v5 = vmax.f32 %v556_v1, 0.0 }
 0x192   :  { %v662_v6 = vpack.c.bf16 %v630_v3, %v629_v2 }
 0x193   :  { %v661_v7 = vpack.c.bf16 %v628_v5, %v627_v4 }
 0x195   :  { %2293 = vmatprep.mubr.msk.bf16.mxu1 %vm686_vm1, %v661_v7 }
 0x196   :  { %2294 = vmatmul.mubr.msk.bf16.gmra.mrb[60].mxu1 %vm686_vm1, %v662_v6 }
 0x1f1   :  { %v2235_v9 = vpop.f32.mrb[0].mxu1 }
 0x1f2   :  { %v826_v10 = vadd.f32 %v2235_v9, %v2862_v8  ;;  %v817_v11 = vpop.f32.mrb[1].mxu1 }
 0x1f3   :  { %v818_v36 = vadd.f32 %v2862_v8, %v817_v11  ;;  %v2236_v12 = vpop.f32.mrb[2].mxu1 }
 0x1f4   :  { %v1074_v14 = vmax.f32 %v826_v10, 0.0  ;;  %v829_v15 = vadd.f32 %v2236_v12, %v2862_v8  ;;  %v820_v16 = vpop.f32.mrb[3].mxu1 }
 0x1f5   :  { %v1072_v17 = vmax.f32 %v818_v36, 0.0  ;;  %v821_v18 = vadd.f32 %v2862_v8, %v820_v16 }
 0x1f6   :  { %v1075_v19 = vmax.f32 %v829_v15, 0.0  ;;  %v1145_v20 = vmul.f32 %v2869_v13, %v1074_v14 }
 0x1f7   :  { %v1073_v21 = vmax.f32 %v821_v18, 0.0  ;;  %v1143_v22 = vmul.f32 %v2869_v13, %v1072_v17 }
 0x1f8   :  { %v1213_v23 = vsel %vm686_vm1, %v1145_v20, 0.0  ;;  %v1146_v24 = vmul.f32 %v2869_v13, %v1075_v19 }
 0x1f9   :  { %1214 = vadd.xlane.f32.xlu1 %v1213_v23  ;;  %v2239_v25 = vpop.f32.mrb[4].mxu1  ;;  %v1207_v26 = vsel %vm686_vm1, %v1143_v22, 0.0  ;;  %v1144_v27 = vmul.f32 %v2869_v13, %v1073_v21 }
 0x1fa   :  { %v842_v28 = vadd.f32 %v2239_v25, %v2862_v8  ;;  %v833_v29 = vpop.f32.mrb[5].mxu1  ;;  %1208 = vadd.xlane.f32.xlu0 %v1207_v26  ;;  %v1216_v35 = vsel %vm686_vm1, %v1146_v24, 0.0 }
 0x1fb   :  { %v834_v30 = vadd.f32 %v2862_v8, %v833_v29  ;;  %v2240_v31 = vpop.f32.mrb[6].mxu1  ;;  %v1210_v39 = vsel %vm686_vm1, %v1144_v27, 0.0 }
 0x1fc   :  { %v1078_v32 = vmax.f32 %v842_v28, 0.0  ;;  %v845_v33 = vadd.f32 %v2240_v31, %v2862_v8  ;;  %v836_v34 = vpop.f32.mrb[7].mxu1 }
 0x1fd   :  { %v1076_v37 = vmax.f32 %v834_v30, 0.0  ;;  %v837_v38 = vadd.f32 %v2862_v8, %v836_v34  ;;  %1217 = vadd.xlane.f32.xlu1 %v1216_v35 }
 0x1fe   :  { %v1079_v40 = vmax.f32 %v845_v33, 0.0  ;;  %1211 = vadd.xlane.f32.xlu0 %v1210_v39  ;;  %v1149_v41 = vmul.f32 %v2869_v13, %v1078_v32 }
 0x1ff   :  { %v1077_v42 = vmax.f32 %v837_v38, 0.0  ;;  %v1147_v46 = vmul.f32 %v2869_v13, %v1076_v37 }
 0x200   :  { %v1225_v43 = vsel %vm686_vm1, %v1149_v41, 0.0  ;;  %v1150_v44 = vmul.f32 %v2869_v13, %v1079_v40 }
 0x201   :  { %v2243_v45 = vpop.f32.mrb[8].mxu1  ;;  %v1148_v50 = vmul.f32 %v2869_v13, %v1077_v42  ;;  %v1219_v58 = vsel %vm686_vm1, %v1147_v46, 0.0 }
 0x202   :  { %v858_v47 = vadd.f32 %v2243_v45, %v2862_v8  ;;  %v849_v48 = vpop.f32.mrb[9].mxu1  ;;  %1226 = vadd.xlane.f32.xlu0 %v1225_v43  ;;  %v1228_v49 = vsel %vm686_vm1, %v1150_v44, 0.0 }
 0x203   :  { %v850_v51 = vadd.f32 %v2862_v8, %v849_v48  ;;  %1229 = vadd.xlane.f32.xlu1 %v1228_v49  ;;  %v2244_v52 = vpop.f32.mrb[10].mxu1  ;;  %v1222_v60 = vsel %vm686_vm1, %v1148_v50, 0.0 }
 0x204   :  { %v1082_v53 = vmax.f32 %v858_v47, 0.0  ;;  %v861_v54 = vadd.f32 %v2244_v52, %v2862_v8  ;;  %v852_v55 = vpop.f32.mrb[11].mxu1 }
 0x205   :  { %v1080_v56 = vmax.f32 %v850_v51, 0.0  ;;  %v853_v57 = vadd.f32 %v2862_v8, %v852_v55 }
 0x206   :  { %v1083_v59 = vmax.f32 %v861_v54, 0.0  ;;  %1220 = vadd.xlane.f32.xlu0 %v1219_v58  ;;  %v1153_v61 = vmul.f32 %v2869_v13, %v1082_v53 }
 0x207   :  { %v1081_v62 = vmax.f32 %v853_v57, 0.0  ;;  %1223 = vadd.xlane.f32.xlu1 %v1222_v60  ;;  %v1151_v2 = vmul.f32 %v2869_v13, %v1080_v56 }
 0x208   :  { %v1237_v63 = vsel %vm686_vm1, %v1153_v61, 0.0  ;;  %v1154_v0 = vmul.f32 %v2869_v13, %v1083_v59 }
 0x209   :  { %v2247_v1 = vpop.f32.mrb[12].mxu1  ;;  %v1152_v6 = vmul.f32 %v2869_v13, %v1081_v62  ;;  %v1231_v15 = vsel %vm686_vm1, %v1151_v2, 0.0 }
 0x20a   :  { %v874_v3 = vadd.f32 %v2247_v1, %v2862_v8  ;;  %v865_v4 = vpop.f32.mrb[13].mxu1  ;;  %1238 = vadd.xlane.f32.xlu0 %v1237_v63  ;;  %v1240_v5 = vsel %vm686_vm1, %v1154_v0, 0.0 }
 0x20b   :  { %v866_v7 = vadd.f32 %v2862_v8, %v865_v4  ;;  %v2248_v9 = vpop.f32.mrb[14].mxu1  ;;  %1241 = vadd.xlane.f32.xlu1 %v1240_v5  ;;  %v1234_v17 = vsel %vm686_vm1, %v1152_v6, 0.0 }
 0x20c   :  { %v1086_v10 = vmax.f32 %v874_v3, 0.0  ;;  %v877_v11 = vadd.f32 %v2248_v9, %v2862_v8  ;;  %v868_v36 = vpop.f32.mrb[15].mxu1 }
 0x20d   :  { %v1084_v12 = vmax.f32 %v866_v7, 0.0  ;;  %v869_v14 = vadd.f32 %v2862_v8, %v868_v36 }
 0x20e   :  { %v1087_v16 = vmax.f32 %v877_v11, 0.0  ;;  %1232 = vadd.xlane.f32.xlu0 %v1231_v15  ;;  %v1157_v18 = vmul.f32 %v2869_v13, %v1086_v10 }
 0x20f   :  { %v1085_v19 = vmax.f32 %v869_v14, 0.0  ;;  %1235 = vadd.xlane.f32.xlu1 %v1234_v17  ;;  %v1155_v23 = vmul.f32 %v2869_v13, %v1084_v12 }
 0x210   :  { %v1249_v20 = vsel %vm686_vm1, %v1157_v18, 0.0  ;;  %v1158_v21 = vmul.f32 %v2869_v13, %v1087_v16 }
 0x211   :  { %v2251_v22 = vpop.f32.mrb[16].mxu1  ;;  %v1156_v27 = vmul.f32 %v2869_v13, %v1085_v19  ;;  %v1243_v35 = vsel %vm686_vm1, %v1155_v23, 0.0 }
 0x212   :  { %v890_v24 = vadd.f32 %v2251_v22, %v2862_v8  ;;  %v881_v25 = vpop.f32.mrb[17].mxu1  ;;  %1250 = vadd.xlane.f32.xlu0 %v1249_v20  ;;  %v1252_v26 = vsel %vm686_vm1, %v1158_v21, 0.0 }
 0x213   :  { %v882_v28 = vadd.f32 %v2862_v8, %v881_v25  ;;  %v2252_v29 = vpop.f32.mrb[18].mxu1  ;;  %1253 = vadd.xlane.f32.xlu1 %v1252_v26  ;;  %v1246_v38 = vsel %vm686_vm1, %v1156_v27, 0.0 }
 0x214   :  { %v1090_v30 = vmax.f32 %v890_v24, 0.0  ;;  %v893_v31 = vadd.f32 %v2252_v29, %v2862_v8  ;;  %v884_v32 = vpop.f32.mrb[19].mxu1 }
 0x215   :  { %v1088_v33 = vmax.f32 %v882_v28, 0.0  ;;  %v885_v34 = vadd.f32 %v2862_v8, %v884_v32 }
 0x216   :  { %v1091_v37 = vmax.f32 %v893_v31, 0.0  ;;  %1244 = vadd.xlane.f32.xlu0 %v1243_v35  ;;  %v1161_v39 = vmul.f32 %v2869_v13, %v1090_v30 }
 0x217   :  { %v1089_v40 = vmax.f32 %v885_v34, 0.0  ;;  %1247 = vadd.xlane.f32.xlu1 %v1246_v38  ;;  %v1159_v44 = vmul.f32 %v2869_v13, %v1088_v33 }
 0x218   :  { %v1261_v41 = vsel %vm686_vm1, %v1161_v39, 0.0  ;;  %v1162_v42 = vmul.f32 %v2869_v13, %v1091_v37 }
 0x219   :  { %v2255_v43 = vpop.f32.mrb[20].mxu1  ;;  %v1160_v48 = vmul.f32 %v2869_v13, %v1089_v40  ;;  %v1255_v56 = vsel %vm686_vm1, %v1159_v44, 0.0 }
 0x21a   :  { %v906_v45 = vadd.f32 %v2255_v43, %v2862_v8  ;;  %v897_v46 = vpop.f32.mrb[21].mxu1  ;;  %1262 = vadd.xlane.f32.xlu0 %v1261_v41  ;;  %v1264_v47 = vsel %vm686_vm1, %v1162_v42, 0.0 }
 0x21b   :  { %v898_v49 = vadd.f32 %v2862_v8, %v897_v46  ;;  %v2256_v50 = vpop.f32.mrb[22].mxu1  ;;  %1265 = vadd.xlane.f32.xlu1 %v1264_v47  ;;  %v1258_v58 = vsel %vm686_vm1, %v1160_v48, 0.0 }
 0x21c   :  { %v1094_v51 = vmax.f32 %v906_v45, 0.0  ;;  %v909_v52 = vadd.f32 %v2256_v50, %v2862_v8  ;;  %v900_v53 = vpop.f32.mrb[23].mxu1 }
 0x21d   :  { %v1092_v54 = vmax.f32 %v898_v49, 0.0  ;;  %v901_v55 = vadd.f32 %v2862_v8, %v900_v53 }
 0x21e   :  { %v1095_v57 = vmax.f32 %v909_v52, 0.0  ;;  %1256 = vadd.xlane.f32.xlu0 %v1255_v56  ;;  %v1165_v59 = vmul.f32 %v2869_v13, %v1094_v51 }
 0x21f   :  { %v1093_v60 = vmax.f32 %v901_v55, 0.0  ;;  %1259 = vadd.xlane.f32.xlu1 %v1258_v58  ;;  %v1163_v0 = vmul.f32 %v2869_v13, %v1092_v54 }
 0x220   :  { %v1273_v61 = vsel %vm686_vm1, %v1165_v59, 0.0  ;;  %v1166_v62 = vmul.f32 %v2869_v13, %v1095_v57 }
 0x221   :  { %v2259_v63 = vpop.f32.mrb[24].mxu1  ;;  %v1164_v4 = vmul.f32 %v2869_v13, %v1093_v60  ;;  %v1267_v12 = vsel %vm686_vm1, %v1163_v0, 0.0 }
 0x222   :  { %v922_v1 = vadd.f32 %v2259_v63, %v2862_v8  ;;  %v913_v2 = vpop.f32.mrb[25].mxu1  ;;  %1274 = vadd.xlane.f32.xlu0 %v1273_v61  ;;  %v1276_v3 = vsel %vm686_vm1, %v1166_v62, 0.0 }
 0x223   :  { %v914_v5 = vadd.f32 %v2862_v8, %v913_v2  ;;  %v2260_v6 = vpop.f32.mrb[26].mxu1  ;;  %1277 = vadd.xlane.f32.xlu1 %v1276_v3  ;;  %v1270_v15 = vsel %vm686_vm1, %v1164_v4, 0.0 }
 0x224   :  { %v1098_v7 = vmax.f32 %v922_v1, 0.0  ;;  %v925_v9 = vadd.f32 %v2260_v6, %v2862_v8  ;;  %v916_v10 = vpop.f32.mrb[27].mxu1 }
 0x225   :  { %v1096_v11 = vmax.f32 %v914_v5, 0.0  ;;  %v917_v36 = vadd.f32 %v2862_v8, %v916_v10 }
 0x226   :  { %v1099_v14 = vmax.f32 %v925_v9, 0.0  ;;  %1268 = vadd.xlane.f32.xlu0 %v1267_v12  ;;  %v1169_v16 = vmul.f32 %v2869_v13, %v1098_v7 }
 0x227   :  { %v1097_v17 = vmax.f32 %v917_v36, 0.0  ;;  %1271 = vadd.xlane.f32.xlu1 %v1270_v15  ;;  %v1167_v21 = vmul.f32 %v2869_v13, %v1096_v11 }
 0x228   :  { %v1285_v18 = vsel %vm686_vm1, %v1169_v16, 0.0  ;;  %v1170_v19 = vmul.f32 %v2869_v13, %v1099_v14 }
 0x229   :  { %v2263_v20 = vpop.f32.mrb[28].mxu1  ;;  %v1168_v25 = vmul.f32 %v2869_v13, %v1097_v17  ;;  %v1279_v33 = vsel %vm686_vm1, %v1167_v21, 0.0 }
 0x22a   :  { %v938_v22 = vadd.f32 %v2263_v20, %v2862_v8  ;;  %v929_v23 = vpop.f32.mrb[29].mxu1  ;;  %1286 = vadd.xlane.f32.xlu0 %v1285_v18  ;;  %v1288_v24 = vsel %vm686_vm1, %v1170_v19, 0.0 }
 0x22b   :  { %v930_v26 = vadd.f32 %v2862_v8, %v929_v23  ;;  %v2264_v27 = vpop.f32.mrb[30].mxu1  ;;  %1289 = vadd.xlane.f32.xlu1 %v1288_v24  ;;  %v1282_v35 = vsel %vm686_vm1, %v1168_v25, 0.0 }
 0x22c   :  { %v1102_v28 = vmax.f32 %v938_v22, 0.0  ;;  %v941_v29 = vadd.f32 %v2264_v27, %v2862_v8  ;;  %v932_v30 = vpop.f32.mrb[31].mxu1 }
 0x22d   :  { %v1100_v31 = vmax.f32 %v930_v26, 0.0  ;;  %v933_v32 = vadd.f32 %v2862_v8, %v932_v30 }
 0x22e   :  { %v1103_v34 = vmax.f32 %v941_v29, 0.0  ;;  %1280 = vadd.xlane.f32.xlu0 %v1279_v33  ;;  %v1173_v37 = vmul.f32 %v2869_v13, %v1102_v28 }
 0x22f   :  { %v1101_v38 = vmax.f32 %v933_v32, 0.0  ;;  %1283 = vadd.xlane.f32.xlu1 %v1282_v35  ;;  %v1171_v42 = vmul.f32 %v2869_v13, %v1100_v31 }
 0x230   :  { %v1297_v39 = vsel %vm686_vm1, %v1173_v37, 0.0  ;;  %v1174_v40 = vmul.f32 %v2869_v13, %v1103_v34 }
 0x231   :  { %v2267_v41 = vpop.f32.mrb[32].mxu1  ;;  %v1172_v46 = vmul.f32 %v2869_v13, %v1101_v38  ;;  %v1291_v54 = vsel %vm686_vm1, %v1171_v42, 0.0 }
 0x232   :  { %v954_v43 = vadd.f32 %v2267_v41, %v2862_v8  ;;  %v945_v44 = vpop.f32.mrb[33].mxu1  ;;  %1298 = vadd.xlane.f32.xlu0 %v1297_v39  ;;  %v1300_v45 = vsel %vm686_vm1, %v1174_v40, 0.0 }
 0x233   :  { %v946_v47 = vadd.f32 %v2862_v8, %v945_v44  ;;  %v2268_v48 = vpop.f32.mrb[34].mxu1  ;;  %1301 = vadd.xlane.f32.xlu1 %v1300_v45  ;;  %v1294_v56 = vsel %vm686_vm1, %v1172_v46, 0.0 }
 0x234   :  { %v1106_v49 = vmax.f32 %v954_v43, 0.0  ;;  %v957_v50 = vadd.f32 %v2268_v48, %v2862_v8  ;;  %v948_v51 = vpop.f32.mrb[35].mxu1 }
 0x235   :  { %v1104_v52 = vmax.f32 %v946_v47, 0.0  ;;  %v949_v53 = vadd.f32 %v2862_v8, %v948_v51 }
 0x236   :  { %v1107_v55 = vmax.f32 %v957_v50, 0.0  ;;  %1292 = vadd.xlane.f32.xlu0 %v1291_v54  ;;  %v1177_v57 = vmul.f32 %v2869_v13, %v1106_v49 }
 0x237   :  { %v1105_v58 = vmax.f32 %v949_v53, 0.0  ;;  %1295 = vadd.xlane.f32.xlu1 %v1294_v56  ;;  %v1175_v62 = vmul.f32 %v2869_v13, %v1104_v52 }
 0x238   :  { %v1309_v59 = vsel %vm686_vm1, %v1177_v57, 0.0  ;;  %v1178_v60 = vmul.f32 %v2869_v13, %v1107_v55 }
 0x239   :  { %v2271_v61 = vpop.f32.mrb[36].mxu1  ;;  %v1176_v2 = vmul.f32 %v2869_v13, %v1105_v58  ;;  %v1303_v11 = vsel %vm686_vm1, %v1175_v62, 0.0 }
 0x23a   :  { %v970_v63 = vadd.f32 %v2271_v61, %v2862_v8  ;;  %v961_v0 = vpop.f32.mrb[37].mxu1  ;;  %1310 = vadd.xlane.f32.xlu0 %v1309_v59  ;;  %v1312_v1 = vsel %vm686_vm1, %v1178_v60, 0.0 }
 0x23b   :  { %v962_v3 = vadd.f32 %v2862_v8, %v961_v0  ;;  %v2272_v4 = vpop.f32.mrb[38].mxu1  ;;  %1313 = vadd.xlane.f32.xlu1 %v1312_v1  ;;  %v1306_v12 = vsel %vm686_vm1, %v1176_v2, 0.0 }
 0x23c   :  { %v1110_v5 = vmax.f32 %v970_v63, 0.0  ;;  %v973_v6 = vadd.f32 %v2272_v4, %v2862_v8  ;;  %v964_v7 = vpop.f32.mrb[39].mxu1 }
 0x23d   :  { %v1108_v9 = vmax.f32 %v962_v3, 0.0  ;;  %v965_v10 = vadd.f32 %v2862_v8, %v964_v7 }
 0x23e   :  { %v1111_v36 = vmax.f32 %v973_v6, 0.0  ;;  %1304 = vadd.xlane.f32.xlu0 %v1303_v11  ;;  %v1181_v14 = vmul.f32 %v2869_v13, %v1110_v5 }
 0x23f   :  { %v1109_v15 = vmax.f32 %v965_v10, 0.0  ;;  %1307 = vadd.xlane.f32.xlu1 %v1306_v12  ;;  %v1179_v19 = vmul.f32 %v2869_v13, %v1108_v9 }
 0x240   :  { %v1321_v16 = vsel %vm686_vm1, %v1181_v14, 0.0  ;;  %v1182_v17 = vmul.f32 %v2869_v13, %v1111_v36 }
 0x241   :  { %v2275_v18 = vpop.f32.mrb[40].mxu1  ;;  %v1180_v23 = vmul.f32 %v2869_v13, %v1109_v15  ;;  %v1315_v31 = vsel %vm686_vm1, %v1179_v19, 0.0 }
 0x242   :  { %v986_v20 = vadd.f32 %v2275_v18, %v2862_v8  ;;  %v977_v21 = vpop.f32.mrb[41].mxu1  ;;  %1322 = vadd.xlane.f32.xlu0 %v1321_v16  ;;  %v1324_v22 = vsel %vm686_vm1, %v1182_v17, 0.0 }
 0x243   :  { %v978_v24 = vadd.f32 %v2862_v8, %v977_v21  ;;  %v2276_v25 = vpop.f32.mrb[42].mxu1  ;;  %1325 = vadd.xlane.f32.xlu1 %v1324_v22  ;;  %v1318_v33 = vsel %vm686_vm1, %v1180_v23, 0.0 }
 0x244   :  { %v1114_v26 = vmax.f32 %v986_v20, 0.0  ;;  %v989_v27 = vadd.f32 %v2276_v25, %v2862_v8  ;;  %v980_v28 = vpop.f32.mrb[43].mxu1 }
 0x245   :  { %v1112_v29 = vmax.f32 %v978_v24, 0.0  ;;  %v981_v30 = vadd.f32 %v2862_v8, %v980_v28 }
 0x246   :  { %v1115_v32 = vmax.f32 %v989_v27, 0.0  ;;  %1316 = vadd.xlane.f32.xlu0 %v1315_v31  ;;  %v1185_v34 = vmul.f32 %v2869_v13, %v1114_v26 }
 0x247   :  { %v1113_v35 = vmax.f32 %v981_v30, 0.0  ;;  %1319 = vadd.xlane.f32.xlu1 %v1318_v33  ;;  %v1183_v40 = vmul.f32 %v2869_v13, %v1112_v29 }
 0x248   :  { %v1333_v37 = vsel %vm686_vm1, %v1185_v34, 0.0  ;;  %v1186_v38 = vmul.f32 %v2869_v13, %v1115_v32 }
 0x249   :  { %v2279_v39 = vpop.f32.mrb[44].mxu1  ;;  %v1184_v44 = vmul.f32 %v2869_v13, %v1113_v35  ;;  %v1327_v52 = vsel %vm686_vm1, %v1183_v40, 0.0 }
 0x24a   :  { %v1002_v41 = vadd.f32 %v2279_v39, %v2862_v8  ;;  %v993_v42 = vpop.f32.mrb[45].mxu1  ;;  %1334 = vadd.xlane.f32.xlu0 %v1333_v37  ;;  %v1336_v43 = vsel %vm686_vm1, %v1186_v38, 0.0 }
 0x24b   :  { %v994_v45 = vadd.f32 %v2862_v8, %v993_v42  ;;  %v2280_v46 = vpop.f32.mrb[46].mxu1  ;;  %1337 = vadd.xlane.f32.xlu1 %v1336_v43  ;;  %v1330_v54 = vsel %vm686_vm1, %v1184_v44, 0.0 }
 0x24c   :  { %v1118_v47 = vmax.f32 %v1002_v41, 0.0  ;;  %v1005_v48 = vadd.f32 %v2280_v46, %v2862_v8  ;;  %v996_v49 = vpop.f32.mrb[47].mxu1 }
 0x24d   :  { %v1116_v50 = vmax.f32 %v994_v45, 0.0  ;;  %v997_v51 = vadd.f32 %v2862_v8, %v996_v49 }
 0x24e   :  { %v1119_v53 = vmax.f32 %v1005_v48, 0.0  ;;  %1328 = vadd.xlane.f32.xlu0 %v1327_v52  ;;  %v1189_v55 = vmul.f32 %v2869_v13, %v1118_v47 }
 0x24f   :  { %v1117_v56 = vmax.f32 %v997_v51, 0.0  ;;  %1331 = vadd.xlane.f32.xlu1 %v1330_v54  ;;  %v1187_v60 = vmul.f32 %v2869_v13, %v1116_v50 }
 0x250   :  { %v1345_v57 = vsel %vm686_vm1, %v1189_v55, 0.0  ;;  %v1190_v58 = vmul.f32 %v2869_v13, %v1119_v53 }
 0x251   :  { %v2283_v59 = vpop.f32.mrb[48].mxu1  ;;  %v1188_v0 = vmul.f32 %v2869_v13, %v1117_v56  ;;  %v1339_v9 = vsel %vm686_vm1, %v1187_v60, 0.0 }
 0x252   :  { %v1018_v61 = vadd.f32 %v2283_v59, %v2862_v8  ;;  %v1009_v62 = vpop.f32.mrb[49].mxu1  ;;  %1346 = vadd.xlane.f32.xlu0 %v1345_v57  ;;  %v1348_v63 = vsel %vm686_vm1, %v1190_v58, 0.0 }
 0x253   :  { %v1010_v1 = vadd.f32 %v2862_v8, %v1009_v62  ;;  %v2284_v2 = vpop.f32.mrb[50].mxu1  ;;  %1349 = vadd.xlane.f32.xlu1 %v1348_v63  ;;  %v1342_v11 = vsel %vm686_vm1, %v1188_v0, 0.0 }
 0x254   :  { %v1122_v3 = vmax.f32 %v1018_v61, 0.0  ;;  %v1021_v4 = vadd.f32 %v2284_v2, %v2862_v8  ;;  %v1012_v5 = vpop.f32.mrb[51].mxu1 }
 0x255   :  { %v1120_v6 = vmax.f32 %v1010_v1, 0.0  ;;  %v1013_v7 = vadd.f32 %v2862_v8, %v1012_v5 }
 0x256   :  { %v1123_v10 = vmax.f32 %v1021_v4, 0.0  ;;  %1340 = vadd.xlane.f32.xlu0 %v1339_v9  ;;  %v1193_v36 = vmul.f32 %v2869_v13, %v1122_v3 }
 0x257   :  { %v1121_v12 = vmax.f32 %v1013_v7, 0.0  ;;  %1343 = vadd.xlane.f32.xlu1 %v1342_v11  ;;  %v1191_v17 = vmul.f32 %v2869_v13, %v1120_v6 }
 0x258   :  { %v1357_v14 = vsel %vm686_vm1, %v1193_v36, 0.0  ;;  %v1194_v15 = vmul.f32 %v2869_v13, %v1123_v10 }
 0x259   :  { %v2287_v16 = vpop.f32.mrb[52].mxu1  ;;  %v1192_v21 = vmul.f32 %v2869_v13, %v1121_v12  ;;  %v1351_v29 = vsel %vm686_vm1, %v1191_v17, 0.0 }
 0x25a   :  { %v1034_v18 = vadd.f32 %v2287_v16, %v2862_v8  ;;  %v1025_v19 = vpop.f32.mrb[53].mxu1  ;;  %1358 = vadd.xlane.f32.xlu0 %v1357_v14  ;;  %v1360_v20 = vsel %vm686_vm1, %v1194_v15, 0.0 }
 0x25b   :  { %v1026_v22 = vadd.f32 %v2862_v8, %v1025_v19  ;;  %v2288_v23 = vpop.f32.mrb[54].mxu1  ;;  %1361 = vadd.xlane.f32.xlu1 %v1360_v20  ;;  %v1354_v31 = vsel %vm686_vm1, %v1192_v21, 0.0 }
 0x25c   :  { %v1126_v24 = vmax.f32 %v1034_v18, 0.0  ;;  %v1037_v25 = vadd.f32 %v2288_v23, %v2862_v8  ;;  %v1028_v26 = vpop.f32.mrb[55].mxu1  ;;  %v3061_v18 = vld [vmem:[#allocation2] ss:$0 sm:$0xff] }
 0x25d   :  { %v1124_v27 = vmax.f32 %v1026_v22, 0.0  ;;  %v1029_v28 = vadd.f32 %v2862_v8, %v1028_v26 }
 0x25e   :  { %v1127_v30 = vmax.f32 %v1037_v25, 0.0  ;;  %1352 = vadd.xlane.f32.xlu0 %v1351_v29  ;;  %v1197_v32 = vmul.f32 %v2869_v13, %v1126_v24 }
 0x25f   :  { %v1125_v33 = vmax.f32 %v1029_v28, 0.0  ;;  %1355 = vadd.xlane.f32.xlu1 %v1354_v31  ;;  %v1195_v38 = vmul.f32 %v2869_v13, %v1124_v27 }
 0x260   :  { %v1369_v34 = vsel %vm686_vm1, %v1197_v32, 0.0  ;;  %v1198_v35 = vmul.f32 %v2869_v13, %v1127_v30 }
 0x261   :  { %v2291_v37 = vpop.f32.mrb[56].mxu1  ;;  %v1196_v42 = vmul.f32 %v2869_v13, %v1125_v33  ;;  %v1363_v50 = vsel %vm686_vm1, %v1195_v38, 0.0 }
 0x262   :  { %v1050_v39 = vadd.f32 %v2291_v37, %v2862_v8  ;;  %v1041_v40 = vpop.f32.mrb[57].mxu1  ;;  %1370 = vadd.xlane.f32.xlu0 %v1369_v34  ;;  %v1372_v41 = vsel %vm686_vm1, %v1198_v35, 0.0 }
 0x263   :  { %v1042_v43 = vadd.f32 %v2862_v8, %v1041_v40  ;;  %v2292_v44 = vpop.f32.mrb[58].mxu1  ;;  %1373 = vadd.xlane.f32.xlu1 %v1372_v41  ;;  %v1366_v52 = vsel %vm686_vm1, %v1196_v42, 0.0 }
 0x264   :  { %v1130_v45 = vmax.f32 %v1050_v39, 0.0  ;;  %v1053_v46 = vadd.f32 %v2292_v44, %v2862_v8  ;;  %v1044_v47 = vpop.f32.mrb[59].mxu1 }
 0x265   :  { %v1128_v48 = vmax.f32 %v1042_v43, 0.0  ;;  %v1045_v49 = vadd.f32 %v2862_v8, %v1044_v47 }
 0x266   :  { %v1131_v51 = vmax.f32 %v1053_v46, 0.0  ;;  %1364 = vadd.xlane.f32.xlu0 %v1363_v50  ;;  %v1201_v53 = vmul.f32 %v2869_v13, %v1130_v45 }
 0x267   :  { %v1129_v54 = vmax.f32 %v1045_v49, 0.0  ;;  %1367 = vadd.xlane.f32.xlu1 %v1366_v52  ;;  %v1199_v58 = vmul.f32 %v2869_v13, %v1128_v48 }
 0x268   :  { %v1381_v55 = vsel %vm686_vm1, %v1201_v53, 0.0  ;;  %v1202_v56 = vmul.f32 %v2869_v13, %v1131_v51 }
 0x269   :  { %v2295_v57 = vpop.f32.mrb[60].mxu1  ;;  %v1200_v62 = vmul.f32 %v2869_v13, %v1129_v54  ;;  %v1375_v6 = vsel %vm686_vm1, %v1199_v58, 0.0 }
 0x26a   :  { %v1066_v59 = vadd.f32 %v2295_v57, %v2862_v8  ;;  %v1057_v60 = vpop.f32.mrb[61].mxu1  ;;  %1382 = vadd.xlane.f32.xlu0 %v1381_v55  ;;  %v1384_v61 = vsel %vm686_vm1, %v1202_v56, 0.0 }
 0x26b   :  { %v1058_v63 = vadd.f32 %v2862_v8, %v1057_v60  ;;  %v2296_v0 = vpop.f32.mrb[62].mxu1  ;;  %1385 = vadd.xlane.f32.xlu1 %v1384_v61  ;;  %v1378_v7 = vsel %vm686_vm1, %v1200_v62, 0.0 }
 0x26c   :  { %v1069_v1 = vadd.f32 %v2296_v0, %v2862_v8  ;;  %v1060_v2 = vpop.f32.mrb[63].mxu1  ;;  %v1134_v3 = vmax.f32 %v1066_v59, 0.0 }
 0x26d   :  { %v1132_v4 = vmax.f32 %v1058_v63, 0.0  ;;  %v1061_v5 = vadd.f32 %v2862_v8, %v1060_v2 }
 0x26e   :  { %1376 = vadd.xlane.f32.xlu0 %v1375_v6  ;;  %v1135_v9 = vmax.f32 %v1069_v1, 0.0  ;;  %v1205_v14 = vmul.f32 %v2869_v13, %v1134_v3 }
 0x26f   :  { %v1133_v10 = vmax.f32 %v1061_v5, 0.0  ;;  %1379 = vadd.xlane.f32.xlu1 %v1378_v7  ;;  %v1203_v11 = vmul.f32 %v2869_v13, %v1132_v4 }
 0x270   :  { %v1206_v8 = vmul.f32 %v2869_v13, %v1135_v9  ;;  %v1393_v16 = vsel %vm686_vm1, %v1205_v14, 0.0 }
 0x271   :  { %v1387_v36 = vsel %vm686_vm1, %v1203_v11, 0.0  ;;  %v1204_v12 = vmul.f32 %v2869_v13, %v1133_v10 }
 0x272   :  { %1388 = vadd.xlane.f32.xlu0 %v1387_v36  ;;  %v1396_v17 = vsel %vm686_vm1, %v1206_v8, 0.0 }
 0x273   :  { %v1390_v15 = vsel %vm686_vm1, %v1204_v12, 0.0 }
 0x274   :  { %1391 = vadd.xlane.f32.xlu1 %v1390_v15 }
 0x276   :  { %1394 = vadd.xlane.f32.xlu0 %v1393_v16 }
 0x278   :  { %1397 = vadd.xlane.f32.xlu1 %v1396_v17 }
 0x286   :  { %v1215_v19 = vpop.xlane.xlu1 %1214 }
 0x287   :  { %v1408_v20 = vadd.f32 %v3061_v18, %v1215_v19  ;;  %v1209_v21 = vpop.xlane.xlu0 %1208 }
 0x288   :  { %v1406_v22 = vadd.f32 %v3061_v18, %v1209_v21 }
 0x289   :  { %v2034_v23 = vmul.f32 -1.442695, %v1408_v20 }
 0x28a   :  { %v2032_v24 = vmul.f32 -1.442695, %v1406_v22  ;;  %v1218_v25 = vpop.xlane.xlu1 %1217 }
 0x28b   :  { %2307 = vpow2.f32 %v2034_v23  ;;  %v1409_v13 = vadd.f32 %v3061_v18, %v1218_v25  ;;  %v1212_v26 = vpop.xlane.xlu0 %1211 }
 0x28c   :  { %2309 = vpow2.f32 %v2032_v24  ;;  %v1407_v27 = vadd.f32 %v3061_v18, %v1212_v26 }
 0x28d   :  { %v2035_v28 = vmul.f32 -1.442695, %v1409_v13 }
 0x28e   :  { %v2033_v29 = vmul.f32 -1.442695, %v1407_v27 }
 0x28f   :  { %2311 = vpow2.f32 %v2035_v28  ;;  %v1227_v30 = vpop.xlane.xlu0 %1226 }
 0x290   :  { %2313 = vpow2.f32 %v2033_v29  ;;  %v1412_v31 = vadd.f32 %v3061_v18, %v1227_v30  ;;  %v1230_v32 = vpop.xlane.xlu1 %1229 }
 0x291   :  { %v1413_v33 = vadd.f32 %v3061_v18, %v1230_v32 }
 0x292   :  { %v2038_v34 = vmul.f32 -1.442695, %v1412_v31 }
 0x293   :  { %v2039_v35 = vmul.f32 -1.442695, %v1413_v33  ;;  %v1221_v37 = vpop.xlane.xlu0 %1220 }
 0x294   :  { %2315 = vpow2.f32 %v2038_v34  ;;  %v1410_v38 = vadd.f32 %v3061_v18, %v1221_v37  ;;  %v1224_v39 = vpop.xlane.xlu1 %1223 }
 0x295   :  { %v2308_v40 = vpop.eup %2307  ;;  %2317 = vpow2.f32 %v2039_v35  ;;  %v1411_v41 = vadd.f32 %v3061_v18, %v1224_v39 }
 0x296   :  { %v2310_v42 = vpop.eup %2309  ;;  %v1664_v43 = vadd.f32 1.0, %v2308_v40  ;;  %v2036_v44 = vmul.f32 -1.442695, %v1410_v38 }
 0x297   :  { %v1662_v45 = vadd.f32 1.0, %v2310_v42  ;;  %v2037_v46 = vmul.f32 -1.442695, %v1411_v41  ;;  %v1239_v47 = vpop.xlane.xlu0 %1238 }
 0x298   :  { %2319 = vrcp.f32 %v1664_v43  ;;  %v1416_v48 = vadd.f32 %v3061_v18, %v1239_v47  ;;  %v1242_v49 = vpop.xlane.xlu1 %1241 }
 0x299   :  { %v2312_v50 = vpop.eup %2311  ;;  %2321 = vrcp.f32 %v1662_v45  ;;  %v1417_v51 = vadd.f32 %v3061_v18, %v1242_v49 }
 0x29a   :  { %v2314_v52 = vpop.eup %2313  ;;  %v1665_v53 = vadd.f32 1.0, %v2312_v50  ;;  %2323 = vpow2.f32 %v2036_v44  ;;  %v2042_v54 = vmul.f32 -1.442695, %v1416_v48 }
 0x29b   :  { %v1663_v55 = vadd.f32 1.0, %v2314_v52  ;;  %2325 = vpow2.f32 %v2037_v46  ;;  %v2043_v56 = vmul.f32 -1.442695, %v1417_v51  ;;  %v1233_v57 = vpop.xlane.xlu0 %1232 }
 0x29c   :  { %2327 = vrcp.f32 %v1665_v53  ;;  %v1414_v58 = vadd.f32 %v3061_v18, %v1233_v57  ;;  %v1236_v59 = vpop.xlane.xlu1 %1235 }
 0x29d   :  { %2329 = vrcp.f32 %v1663_v55  ;;  %v1415_v60 = vadd.f32 %v3061_v18, %v1236_v59 }
 0x29e   :  { %v2316_v61 = vpop.eup %2315  ;;  %2331 = vpow2.f32 %v2042_v54  ;;  %v2040_v62 = vmul.f32 -1.442695, %v1414_v58 }
 0x29f   :  { %v2318_v63 = vpop.eup %2317  ;;  %v1668_v0 = vadd.f32 1.0, %v2316_v61  ;;  %2333 = vpow2.f32 %v2043_v56  ;;  %v2041_v1 = vmul.f32 -1.442695, %v1415_v60  ;;  %v1251_v2 = vpop.xlane.xlu0 %1250 }
 0x2a0   :  { %v1669_v3 = vadd.f32 1.0, %v2318_v63  ;;  %2335 = vpow2.f32 %v2040_v62  ;;  %v1420_v4 = vadd.f32 %v3061_v18, %v1251_v2  ;;  %v1254_v5 = vpop.xlane.xlu1 %1253 }
 0x2a1   :  { %2337 = vrcp.f32 %v1668_v0  ;;  %v1421_v6 = vadd.f32 %v3061_v18, %v1254_v5 }
 0x2a2   :  { %v2320_v7 = vpop.eup %2319  ;;  %2339 = vrcp.f32 %v1669_v3  ;;  %v2046_v9 = vmul.f32 -1.442695, %v1420_v4 }
 0x2a3   :  { %v2322_v10 = vpop.eup %2321  ;;  %2341 = vpow2.f32 %v2041_v1  ;;  %v2047_v11 = vmul.f32 -1.442695, %v1421_v6  ;;  %v1245_v36 = vpop.xlane.xlu0 %1244 }
 0x2a4   :  { %v2324_v12 = vpop.eup %2323  ;;  %1855 = vst.msk [vmem:[#allocation8] sm:$0xff] %vm1854_vm2, %v2322_v10  ;;  %2343 = vpow2.f32 %v2046_v9  ;;  %v1418_v14 = vadd.f32 %v3061_v18, %v1245_v36  ;;  %v1248_v15 = vpop.xlane.xlu1 %1247 }
 0x2a5   :  { %v2326_v8 = vpop.eup %2325  ;;  %v1666_v16 = vadd.f32 1.0, %v2324_v12  ;;  %2345 = vpow2.f32 %v2047_v11  ;;  %v1419_v17 = vadd.f32 %v3061_v18, %v1248_v15 }
 0x2a6   :  { %v2328_v19 = vpop.eup %2327  ;;  %v1667_v20 = vadd.f32 1.0, %v2326_v8  ;;  %v2044_v21 = vmul.f32 -1.442695, %v1418_v14 }
 0x2a7   :  { %v2330_v22 = vpop.eup %2329  ;;  %2347 = vrcp.f32 %v1666_v16  ;;  %v2045_v23 = vmul.f32 -1.442695, %v1419_v17  ;;  %v1263_v24 = vpop.xlane.xlu0 %1262 }
 0x2a8   :  { %v2332_v25 = vpop.eup %2331  ;;  %2349 = vrcp.f32 %v1667_v20  ;;  %v1424_v13 = vadd.f32 %v3061_v18, %v1263_v24  ;;  %v1266_v26 = vpop.xlane.xlu1 %1265 }
 0x2a9   :  { %v2334_v27 = vpop.eup %2333  ;;  %v1672_v28 = vadd.f32 1.0, %v2332_v25  ;;  %2351 = vpow2.f32 %v2044_v21  ;;  %v1425_v29 = vadd.f32 %v3061_v18, %v1266_v26 }
 0x2aa   :  { %v2336_v30 = vpop.eup %2335  ;;  %v1673_v31 = vadd.f32 1.0, %v2334_v27  ;;  %2353 = vpow2.f32 %v2045_v23  ;;  %v2050_v32 = vmul.f32 -1.442695, %v1424_v13 }
 0x2ab   :  { %v2338_v33 = vpop.eup %2337  ;;  %v1948_v34 = vld [vmem:[#allocation8] sm:$0xff]  ;;  %2355 = vrcp.f32 %v1672_v28  ;;  %v1670_v35 = vadd.f32 1.0, %v2336_v30  ;;  %v2051_v37 = vmul.f32 -1.442695, %v1425_v29  ;;  %v1257_v38 = vpop.xlane.xlu0 %1256 }
 0x2ac   :  { %v2340_v39 = vpop.eup %2339  ;;  %1949 = vst [vmem:[%s3136_s7] sm:$0xff] %v1948_v34  ;;  %2357 = vrcp.f32 %v1673_v31  ;;  %v1422_v40 = vadd.f32 %v3061_v18, %v1257_v38  ;;  %v1260_v41 = vpop.xlane.xlu1 %1259 }
 0x2ad   :  { %v2342_v42 = vpop.eup %2341  ;;  %2359 = vrcp.f32 %v1670_v35  ;;  %v1423_v43 = vadd.f32 %v3061_v18, %v1260_v41 }
 0x2ae   :  { %v2344_v44 = vpop.eup %2343  ;;  %v1671_v45 = vadd.f32 1.0, %v2342_v42  ;;  %2361 = vpow2.f32 %v2050_v32  ;;  %v2048_v48 = vmul.f32 -1.442695, %v1422_v40 }
 0x2af   :  { %v2346_v46 = vpop.eup %2345  ;;  %v1676_v47 = vadd.f32 1.0, %v2344_v44  ;;  %2363 = vpow2.f32 %v2051_v37  ;;  %v1275_v49 = vpop.xlane.xlu0 %1274  ;;  %v2049_v51 = vmul.f32 -1.442695, %v1423_v43 }
 0x2b0   :  { %2365 = vrcp.f32 %v1671_v45  ;;  %v1677_v50 = vadd.f32 1.0, %v2346_v46  ;;  %v1428_v52 = vadd.f32 %v3061_v18, %v1275_v49  ;;  %v1278_v53 = vpop.xlane.xlu1 %1277 }
 0x2b1   :  { %v2348_v54 = vpop.eup %2347  ;;  %2367 = vrcp.f32 %v1676_v47  ;;  %v1429_v55 = vadd.f32 %v3061_v18, %v1278_v53 }
 0x2b2   :  { %v2350_v56 = vpop.eup %2349  ;;  %2369 = vrcp.f32 %v1677_v50  ;;  %v2054_v57 = vmul.f32 -1.442695, %v1428_v52 }
 0x2b3   :  { %v2352_v58 = vpop.eup %2351  ;;  %2371 = vpow2.f32 %v2048_v48  ;;  %v1269_v59 = vpop.xlane.xlu0 %1268  ;;  %v2055_v62 = vmul.f32 -1.442695, %v1429_v55 }
 0x2b4   :  { %v2354_v60 = vpop.eup %2353  ;;  %v1674_v61 = vadd.f32 1.0, %v2352_v58  ;;  %2373 = vpow2.f32 %v2049_v51  ;;  %v1426_v63 = vadd.f32 %v3061_v18, %v1269_v59  ;;  %v1272_v0 = vpop.xlane.xlu1 %1271 }
 0x2b5   :  { %v2356_v1 = vpop.eup %2355  ;;  %v1675_v2 = vadd.f32 1.0, %v2354_v60  ;;  %2375 = vpow2.f32 %v2054_v57  ;;  %v1427_v3 = vadd.f32 %v3061_v18, %v1272_v0 }
 0x2b6   :  { %v2358_v4 = vpop.eup %2357  ;;  %2377 = vrcp.f32 %v1674_v61  ;;  %v2052_v5 = vmul.f32 -1.442695, %v1426_v63 }
 0x2b7   :  { %v2360_v6 = vpop.eup %2359  ;;  %2379 = vrcp.f32 %v1675_v2  ;;  %v2053_v7 = vmul.f32 -1.442695, %v1427_v3  ;;  %v1287_v9 = vpop.xlane.xlu0 %1286 }
 0x2b8   :  { %v2362_v10 = vpop.eup %2361  ;;  %2381 = vpow2.f32 %v2055_v62  ;;  %v1432_v11 = vadd.f32 %v3061_v18, %v1287_v9  ;;  %v1290_v36 = vpop.xlane.xlu1 %1289 }
 0x2b9   :  { %v2364_v12 = vpop.eup %2363  ;;  %v1680_v14 = vadd.f32 1.0, %v2362_v10  ;;  %2383 = vpow2.f32 %v2052_v5  ;;  %v1433_v15 = vadd.f32 %v3061_v18, %v1290_v36 }
 0x2ba   :  { %v2366_v8 = vpop.eup %2365  ;;  %v1681_v16 = vadd.f32 1.0, %v2364_v12  ;;  %2385 = vpow2.f32 %v2053_v7  ;;  %v2058_v17 = vmul.f32 -1.442695, %v1432_v11 }
 0x2bb   :  { %v2368_v19 = vpop.eup %2367  ;;  %2387 = vrcp.f32 %v1680_v14  ;;  %v2059_v20 = vmul.f32 -1.442695, %v1433_v15  ;;  %v1281_v21 = vpop.xlane.xlu0 %1280 }
 0x2bc   :  { %v2370_v22 = vpop.eup %2369  ;;  %2389 = vrcp.f32 %v1681_v16  ;;  %v1430_v23 = vadd.f32 %v3061_v18, %v1281_v21  ;;  %v1284_v24 = vpop.xlane.xlu1 %1283 }
 0x2bd   :  { %v2372_v25 = vpop.eup %2371  ;;  %2391 = vpow2.f32 %v2058_v17  ;;  %v1431_v13 = vadd.f32 %v3061_v18, %v1284_v24 }
 0x2be   :  { %v2374_v26 = vpop.eup %2373  ;;  %v1678_v27 = vadd.f32 1.0, %v2372_v25  ;;  %2393 = vpow2.f32 %v2059_v20  ;;  %v2056_v30 = vmul.f32 -1.442695, %v1430_v23 }
 0x2bf   :  { %v2376_v28 = vpop.eup %2375  ;;  %v1679_v29 = vadd.f32 1.0, %v2374_v26  ;;  %v1299_v31 = vpop.xlane.xlu0 %1298  ;;  %v2057_v34 = vmul.f32 -1.442695, %v1431_v13 }
 0x2c0   :  { %v2378_v32 = vpop.eup %2377  ;;  %2395 = vrcp.f32 %v1678_v27  ;;  %v1684_v33 = vadd.f32 1.0, %v2376_v28  ;;  %v1436_v35 = vadd.f32 %v3061_v18, %v1299_v31  ;;  %v1302_v37 = vpop.xlane.xlu1 %1301 }
 0x2c1   :  { %v2380_v38 = vpop.eup %2379  ;;  %2397 = vrcp.f32 %v1679_v29  ;;  %v1437_v39 = vadd.f32 %v3061_v18, %v1302_v37 }
 0x2c2   :  { %v2382_v40 = vpop.eup %2381  ;;  %2399 = vrcp.f32 %v1684_v33  ;;  %v2062_v46 = vmul.f32 -1.442695, %v1436_v35 }
 0x2c3   :  { %v2384_v41 = vpop.eup %2383  ;;  %v1685_v42 = vadd.f32 1.0, %v2382_v40  ;;  %2401 = vpow2.f32 %v2056_v30  ;;  %v1293_v43 = vpop.xlane.xlu0 %1292  ;;  %v2063_v51 = vmul.f32 -1.442695, %v1437_v39 }
 0x2c4   :  { %v2386_v44 = vpop.eup %2385  ;;  %v1682_v45 = vadd.f32 1.0, %v2384_v41  ;;  %2403 = vpow2.f32 %v2057_v34  ;;  %v1434_v47 = vadd.f32 %v3061_v18, %v1293_v43  ;;  %v1296_v48 = vpop.xlane.xlu1 %1295 }
 0x2c5   :  { %v2388_v49 = vpop.eup %2387  ;;  %2405 = vrcp.f32 %v1685_v42  ;;  %v1683_v50 = vadd.f32 1.0, %v2386_v44  ;;  %v1435_v52 = vadd.f32 %v3061_v18, %v1296_v48 }
 0x2c6   :  { %v2390_v53 = vpop.eup %2389  ;;  %2407 = vrcp.f32 %v1682_v45  ;;  %v2060_v58 = vmul.f32 -1.442695, %v1434_v47 }
 0x2c7   :  { %v2392_v54 = vpop.eup %2391  ;;  %2409 = vrcp.f32 %v1683_v50  ;;  %v1311_v55 = vpop.xlane.xlu0 %1310  ;;  %v2061_v62 = vmul.f32 -1.442695, %v1435_v52 }
 0x2c8   :  { %v2394_v56 = vpop.eup %2393  ;;  %v1688_v57 = vadd.f32 1.0, %v2392_v54  ;;  %2411 = vpow2.f32 %v2062_v46  ;;  %v1440_v59 = vadd.f32 %v3061_v18, %v1311_v55  ;;  %v1314_v60 = vpop.xlane.xlu1 %1313 }
 0x2c9   :  { %v1689_v61 = vadd.f32 1.0, %v2394_v56  ;;  %2413 = vpow2.f32 %v2063_v51  ;;  %v1441_v63 = vadd.f32 %v3061_v18, %v1314_v60 }
 0x2ca   :  { %v2396_v0 = vpop.eup %2395  ;;  %2415 = vrcp.f32 %v1688_v57  ;;  %v2066_v1 = vmul.f32 -1.442695, %v1440_v59 }
 0x2cb   :  { %v2398_v2 = vpop.eup %2397  ;;  %2417 = vrcp.f32 %v1689_v61  ;;  %v2067_v3 = vmul.f32 -1.442695, %v1441_v63  ;;  %v1305_v4 = vpop.xlane.xlu0 %1304 }
 0x2cc   :  { %v2400_v5 = vpop.eup %2399  ;;  %2419 = vpow2.f32 %v2060_v58  ;;  %v1438_v6 = vadd.f32 %v3061_v18, %v1305_v4  ;;  %v1308_v7 = vpop.xlane.xlu1 %1307 }
 0x2cd   :  { %v2402_v9 = vpop.eup %2401  ;;  %2421 = vpow2.f32 %v2061_v62  ;;  %v1439_v10 = vadd.f32 %v3061_v18, %v1308_v7 }
 0x2ce   :  { %v2404_v11 = vpop.eup %2403  ;;  %v1686_v36 = vadd.f32 1.0, %v2402_v9  ;;  %2423 = vpow2.f32 %v2066_v1  ;;  %v2064_v12 = vmul.f32 -1.442695, %v1438_v6 }
 0x2cf   :  { %v2406_v14 = vpop.eup %2405  ;;  %v1687_v15 = vadd.f32 1.0, %v2404_v11  ;;  %2425 = vpow2.f32 %v2067_v3  ;;  %v2065_v8 = vmul.f32 -1.442695, %v1439_v10  ;;  %v1323_v16 = vpop.xlane.xlu0 %1322 }
 0x2d0   :  { %v2408_v17 = vpop.eup %2407  ;;  %2427 = vrcp.f32 %v1686_v36  ;;  %v1444_v19 = vadd.f32 %v3061_v18, %v1323_v16  ;;  %v1326_v20 = vpop.xlane.xlu1 %1325 }
 0x2d1   :  { %v2410_v21 = vpop.eup %2409  ;;  %2429 = vrcp.f32 %v1687_v15  ;;  %v1445_v22 = vadd.f32 %v3061_v18, %v1326_v20 }
 0x2d2   :  { %v2412_v23 = vpop.eup %2411  ;;  %2431 = vpow2.f32 %v2064_v12  ;;  %v2070_v24 = vmul.f32 -1.442695, %v1444_v19 }
 0x2d3   :  { %v2414_v25 = vpop.eup %2413  ;;  %v1692_v13 = vadd.f32 1.0, %v2412_v23  ;;  %2433 = vpow2.f32 %v2065_v8  ;;  %v2071_v26 = vmul.f32 -1.442695, %v1445_v22  ;;  %v1317_v27 = vpop.xlane.xlu0 %1316 }
 0x2d4   :  { %v2416_v28 = vpop.eup %2415  ;;  %v1693_v29 = vadd.f32 1.0, %v2414_v25  ;;  %2435 = vpow2.f32 %v2070_v24  ;;  %v1442_v30 = vadd.f32 %v3061_v18, %v1317_v27  ;;  %v1320_v31 = vpop.xlane.xlu1 %1319 }
 0x2d5   :  { %v2418_v32 = vpop.eup %2417  ;;  %2437 = vrcp.f32 %v1692_v13  ;;  %v1443_v33 = vadd.f32 %v3061_v18, %v1320_v31 }
 0x2d6   :  { %v2420_v34 = vpop.eup %2419  ;;  %2439 = vrcp.f32 %v1693_v29  ;;  %v2068_v35 = vmul.f32 -1.442695, %v1442_v30 }
 0x2d7   :  { %v2422_v37 = vpop.eup %2421  ;;  %v1690_v38 = vadd.f32 1.0, %v2420_v34  ;;  %2441 = vpow2.f32 %v2071_v26  ;;  %v1335_v39 = vpop.xlane.xlu0 %1334  ;;  %v2069_v46 = vmul.f32 -1.442695, %v1443_v33 }
 0x2d8   :  { %v2424_v40 = vpop.eup %2423  ;;  %v1691_v41 = vadd.f32 1.0, %v2422_v37  ;;  %2443 = vpow2.f32 %v2068_v35  ;;  %v1448_v42 = vadd.f32 %v3061_v18, %v1335_v39  ;;  %v1338_v43 = vpop.xlane.xlu1 %1337 }
 0x2d9   :  { %v2426_v44 = vpop.eup %2425  ;;  %2445 = vrcp.f32 %v1690_v38  ;;  %v1696_v45 = vadd.f32 1.0, %v2424_v40  ;;  %v1449_v50 = vadd.f32 %v3061_v18, %v1338_v43 }
 0x2da   :  { %v2428_v47 = vpop.eup %2427  ;;  %2447 = vrcp.f32 %v1691_v41  ;;  %v1697_v48 = vadd.f32 1.0, %v2426_v44  ;;  %v2074_v49 = vmul.f32 -1.442695, %v1448_v42 }
 0x2db   :  { %v2430_v51 = vpop.eup %2429  ;;  %2449 = vrcp.f32 %v1696_v45  ;;  %v1329_v52 = vpop.xlane.xlu0 %1328  ;;  %v2075_v60 = vmul.f32 -1.442695, %v1449_v50 }
 0x2dc   :  { %v2432_v53 = vpop.eup %2431  ;;  %2451 = vrcp.f32 %v1697_v48  ;;  %v1446_v54 = vadd.f32 %v3061_v18, %v1329_v52  ;;  %v1332_v55 = vpop.xlane.xlu1 %1331 }
 0x2dd   :  { %v2434_v56 = vpop.eup %2433  ;;  %v1694_v57 = vadd.f32 1.0, %v2432_v53  ;;  %2453 = vpow2.f32 %v2069_v46  ;;  %v1447_v61 = vadd.f32 %v3061_v18, %v1332_v55 }
 0x2de   :  { %v2436_v58 = vpop.eup %2435  ;;  %v1695_v59 = vadd.f32 1.0, %v2434_v56  ;;  %2455 = vpow2.f32 %v2074_v49  ;;  %v2072_v0 = vmul.f32 -1.442695, %v1446_v54 }
 0x2df   :  { %v2438_v62 = vpop.eup %2437  ;;  %2457 = vrcp.f32 %v1694_v57  ;;  %v1700_v63 = vadd.f32 1.0, %v2436_v58  ;;  %v1347_v1 = vpop.xlane.xlu0 %1346  ;;  %v2073_v10 = vmul.f32 -1.442695, %v1447_v61 }
 0x2e0   :  { %v2440_v2 = vpop.eup %2439  ;;  %2459 = vrcp.f32 %v1695_v59  ;;  %v1452_v3 = vadd.f32 %v3061_v18, %v1347_v1  ;;  %v1350_v4 = vpop.xlane.xlu1 %1349 }
 0x2e1   :  { %v2442_v5 = vpop.eup %2441  ;;  %2461 = vrcp.f32 %v1700_v63  ;;  %v1453_v6 = vadd.f32 %v3061_v18, %v1350_v4 }
 0x2e2   :  { %v2444_v7 = vpop.eup %2443  ;;  %v1701_v9 = vadd.f32 1.0, %v2442_v5  ;;  %2463 = vpow2.f32 %v2075_v60  ;;  %v2078_v12 = vmul.f32 -1.442695, %v1452_v3 }
 0x2e3   :  { %v2446_v11 = vpop.eup %2445  ;;  %v1698_v36 = vadd.f32 1.0, %v2444_v7  ;;  %2465 = vpow2.f32 %v2072_v0  ;;  %v1341_v14 = vpop.xlane.xlu0 %1340  ;;  %v2079_v8 = vmul.f32 -1.442695, %v1453_v6 }
 0x2e4   :  { %v2448_v15 = vpop.eup %2447  ;;  %2467 = vrcp.f32 %v1701_v9  ;;  %v1450_v16 = vadd.f32 %v3061_v18, %v1341_v14  ;;  %v1344_v17 = vpop.xlane.xlu1 %1343 }
 0x2e5   :  { %v2450_v19 = vpop.eup %2449  ;;  %2469 = vrcp.f32 %v1698_v36  ;;  %v1451_v20 = vadd.f32 %v3061_v18, %v1344_v17 }
 0x2e6   :  { %v2452_v21 = vpop.eup %2451  ;;  %2471 = vpow2.f32 %v2073_v10  ;;  %v2076_v22 = vmul.f32 -1.442695, %v1450_v16 }
 0x2e7   :  { %v2454_v23 = vpop.eup %2453  ;;  %2473 = vpow2.f32 %v2078_v12  ;;  %v1359_v24 = vpop.xlane.xlu0 %1358  ;;  %v2077_v26 = vmul.f32 -1.442695, %v1451_v20 }
 0x2e8   :  { %v2456_v25 = vpop.eup %2455  ;;  %v1699_v13 = vadd.f32 1.0, %v2454_v23  ;;  %2475 = vpow2.f32 %v2079_v8  ;;  %v1456_v27 = vadd.f32 %v3061_v18, %v1359_v24  ;;  %v1362_v28 = vpop.xlane.xlu1 %1361 }
 0x2e9   :  { %v2458_v29 = vpop.eup %2457  ;;  %v1704_v30 = vadd.f32 1.0, %v2456_v25  ;;  %2477 = vpow2.f32 %v2076_v22  ;;  %v1457_v31 = vadd.f32 %v3061_v18, %v1362_v28 }
 0x2ea   :  { %v2460_v32 = vpop.eup %2459  ;;  %2479 = vrcp.f32 %v1699_v13  ;;  %v2082_v33 = vmul.f32 -1.442695, %v1456_v27 }
 0x2eb   :  { %v2462_v34 = vpop.eup %2461  ;;  %2481 = vrcp.f32 %v1704_v30  ;;  %v2083_v35 = vmul.f32 -1.442695, %v1457_v31  ;;  %v1353_v37 = vpop.xlane.xlu0 %1352 }
 0x2ec   :  { %v2464_v38 = vpop.eup %2463  ;;  %2483 = vpow2.f32 %v2077_v26  ;;  %v1454_v39 = vadd.f32 %v3061_v18, %v1353_v37  ;;  %v1356_v40 = vpop.xlane.xlu1 %1355 }
 0x2ed   :  { %v2466_v41 = vpop.eup %2465  ;;  %v1705_v42 = vadd.f32 1.0, %v2464_v38  ;;  %2485 = vpow2.f32 %v2082_v33  ;;  %v1455_v43 = vadd.f32 %v3061_v18, %v1356_v40 }
 0x2ee   :  { %v2468_v44 = vpop.eup %2467  ;;  %v1702_v45 = vadd.f32 1.0, %v2466_v41  ;;  %2487 = vpow2.f32 %v2083_v35  ;;  %v2080_v46 = vmul.f32 -1.442695, %v1454_v39 }
 0x2ef   :  { %v2470_v47 = vpop.eup %2469  ;;  %2489 = vrcp.f32 %v1705_v42  ;;  %v2081_v48 = vmul.f32 -1.442695, %v1455_v43  ;;  %v1371_v49 = vpop.xlane.xlu0 %1370 }
 0x2f0   :  { %v2472_v50 = vpop.eup %2471  ;;  %2491 = vrcp.f32 %v1702_v45  ;;  %v1460_v51 = vadd.f32 %v3061_v18, %v1371_v49  ;;  %v1374_v52 = vpop.xlane.xlu1 %1373 }
 0x2f1   :  { %v2474_v53 = vpop.eup %2473  ;;  %v1703_v54 = vadd.f32 1.0, %v2472_v50  ;;  %2493 = vpow2.f32 %v2080_v46  ;;  %v1461_v55 = vadd.f32 %v3061_v18, %v1374_v52 }
 0x2f2   :  { %v2476_v56 = vpop.eup %2475  ;;  %v1708_v57 = vadd.f32 1.0, %v2474_v53  ;;  %2495 = vpow2.f32 %v2081_v48  ;;  %v2086_v60 = vmul.f32 -1.442695, %v1460_v51 }
 0x2f3   :  { %v2478_v58 = vpop.eup %2477  ;;  %2497 = vrcp.f32 %v1703_v54  ;;  %v1709_v59 = vadd.f32 1.0, %v2476_v56  ;;  %v1365_v61 = vpop.xlane.xlu0 %1364  ;;  %v2087_v0 = vmul.f32 -1.442695, %v1461_v55  ;;  %v2563_v54 = vld [vmem:[#allocation2] ss:$0 sm:$0xff] }
 0x2f4   :  { %v2480_v62 = vpop.eup %2479  ;;  %2499 = vrcp.f32 %v1708_v57  ;;  %v1706_v63 = vadd.f32 1.0, %v2478_v58  ;;  %v1458_v1 = vadd.f32 %v3061_v18, %v1365_v61  ;;  %v1368_v2 = vpop.xlane.xlu1 %1367 }
 0x2f5   :  { %v2482_v3 = vpop.eup %2481  ;;  %2501 = vrcp.f32 %v1709_v59  ;;  %v1459_v4 = vadd.f32 %v3061_v18, %v1368_v2 }
 0x2f6   :  { %v2484_v5 = vpop.eup %2483  ;;  %2503 = vrcp.f32 %v1706_v63  ;;  %v2084_v36 = vmul.f32 -1.442695, %v1458_v1 }
 0x2f7   :  { %v2486_v6 = vpop.eup %2485  ;;  %v1707_v7 = vadd.f32 1.0, %v2484_v5  ;;  %2505 = vpow2.f32 %v2086_v60  ;;  %v1383_v9 = vpop.xlane.xlu0 %1382  ;;  %v2085_v16 = vmul.f32 -1.442695, %v1459_v4 }
 0x2f8   :  { %v2488_v10 = vpop.eup %2487  ;;  %v1712_v11 = vadd.f32 1.0, %v2486_v6  ;;  %2507 = vpow2.f32 %v2087_v0  ;;  %v1464_v12 = vadd.f32 %v3061_v18, %v1383_v9  ;;  %v1386_v14 = vpop.xlane.xlu1 %1385 }
 0x2f9   :  { %v2490_v15 = vpop.eup %2489  ;;  %2509 = vrcp.f32 %v1707_v7  ;;  %v1713_v8 = vadd.f32 1.0, %v2488_v10  ;;  %v1465_v17 = vadd.f32 %v3061_v18, %v1386_v14 }
 0x2fa   :  { %v2492_v19 = vpop.eup %2491  ;;  %2511 = vrcp.f32 %v1712_v11  ;;  %v2090_v24 = vmul.f32 -1.442695, %v1464_v12 }
 0x2fb   :  { %v2494_v20 = vpop.eup %2493  ;;  %2513 = vrcp.f32 %v1713_v8  ;;  %v1377_v21 = vpop.xlane.xlu0 %1376  ;;  %v2091_v28 = vmul.f32 -1.442695, %v1465_v17 }
 0x2fc   :  { %v2496_v22 = vpop.eup %2495  ;;  %v1710_v23 = vadd.f32 1.0, %v2494_v20  ;;  %2515 = vpow2.f32 %v2084_v36  ;;  %v1462_v25 = vadd.f32 %v3061_v18, %v1377_v21  ;;  %v1380_v13 = vpop.xlane.xlu1 %1379 }
 0x2fd   :  { %v2498_v26 = vpop.eup %2497  ;;  %v1711_v27 = vadd.f32 1.0, %v2496_v22  ;;  %2517 = vpow2.f32 %v2085_v16  ;;  %v1463_v29 = vadd.f32 %v3061_v18, %v1380_v13 }
 0x2fe   :  { %v2500_v30 = vpop.eup %2499  ;;  %2519 = vrcp.f32 %v1710_v23  ;;  %v2088_v31 = vmul.f32 -1.442695, %v1462_v25 }
 0x2ff   :  { %v2502_v32 = vpop.eup %2501  ;;  %2521 = vrcp.f32 %v1711_v27  ;;  %v2089_v33 = vmul.f32 -1.442695, %v1463_v29  ;;  %v1389_v34 = vpop.xlane.xlu0 %1388 }
 0x300   :  { %v2504_v35 = vpop.eup %2503  ;;  %2523 = vpow2.f32 %v2090_v24  ;;  %v1466_v37 = vadd.f32 %v3061_v18, %v1389_v34 }
 0x301   :  { %v2506_v38 = vpop.eup %2505  ;;  %2525 = vpow2.f32 %v2091_v28  ;;  %v1392_v39 = vpop.xlane.xlu1 %1391 }
 0x302   :  { %v2508_v40 = vpop.eup %2507  ;;  %v1716_v41 = vadd.f32 1.0, %v2506_v38  ;;  %2527 = vpow2.f32 %v2088_v31  ;;  %v2092_v42 = vmul.f32 -1.442695, %v1466_v37  ;;  %v1467_v43 = vadd.f32 %v3061_v18, %v1392_v39 }
 0x303   :  { %v2510_v44 = vpop.eup %2509  ;;  %v1717_v45 = vadd.f32 1.0, %v2508_v40  ;;  %2529 = vpow2.f32 %v2089_v33  ;;  %v1395_v46 = vpop.xlane.xlu0 %1394 }
 0x304   :  { %v2512_v47 = vpop.eup %2511  ;;  %2531 = vrcp.f32 %v1716_v41  ;;  %v2093_v48 = vmul.f32 -1.442695, %v1467_v43  ;;  %v1468_v49 = vadd.f32 %v3061_v18, %v1395_v46 }
 0x305   :  { %v2514_v50 = vpop.eup %2513  ;;  %2533 = vrcp.f32 %v1717_v45  ;;  %v1398_v51 = vpop.xlane.xlu1 %1397 }
 0x306   :  { %v2516_v52 = vpop.eup %2515  ;;  %2535 = vpow2.f32 %v2092_v42  ;;  %v2094_v53 = vmul.f32 -1.442695, %v1468_v49  ;;  %v1469_v55 = vadd.f32 %v2563_v54, %v1398_v51 }
 0x307   :  { %v2518_v56 = vpop.eup %2517  ;;  %v1714_v57 = vadd.f32 1.0, %v2516_v52  ;;  %2537 = vpow2.f32 %v2093_v48 }
 0x308   :  { %v2520_v58 = vpop.eup %2519  ;;  %v1715_v59 = vadd.f32 1.0, %v2518_v56  ;;  %2539 = vpow2.f32 %v2094_v53  ;;  %v2095_v60 = vmul.f32 -1.442695, %v1469_v55 }
 0x309   :  { %v2522_v61 = vpop.eup %2521  ;;  %2541 = vrcp.f32 %v1714_v57 }
 0x30a   :  { %v2524_v62 = vpop.eup %2523  ;;  %2543 = vrcp.f32 %v1715_v59 }
 0x30b   :  { %v2526_v18 = vpop.eup %2525  ;;  %v1720_v63 = vadd.f32 1.0, %v2524_v62  ;;  %2545 = vpow2.f32 %v2095_v60 }
 0x30c   :  { %v2528_v0 = vpop.eup %2527  ;;  %v1721_v1 = vadd.f32 1.0, %v2526_v18 }
 0x30d   :  { %v2530_v2 = vpop.eup %2529  ;;  %2547 = vrcp.f32 %v1720_v63  ;;  %v1718_v3 = vadd.f32 1.0, %v2528_v0 }
 0x30e   :  { %v2532_v4 = vpop.eup %2531  ;;  %2549 = vrcp.f32 %v1721_v1  ;;  %v1719_v5 = vadd.f32 1.0, %v2530_v2 }
 0x30f   :  { %v2534_v6 = vpop.eup %2533  ;;  %2551 = vrcp.f32 %v1718_v3 }
 0x310   :  { %v2536_v7 = vpop.eup %2535  ;;  %2553 = vrcp.f32 %v1719_v5 }
 0x311   :  { %v2538_v9 = vpop.eup %2537  ;;  %v1722_v10 = vadd.f32 1.0, %v2536_v7 }
 0x312   :  { %v2540_v11 = vpop.eup %2539  ;;  %v1723_v36 = vadd.f32 1.0, %v2538_v9 }
 0x313   :  { %v2542_v12 = vpop.eup %2541  ;;  %2555 = vrcp.f32 %v1722_v10  ;;  %v1724_v14 = vadd.f32 1.0, %v2540_v11 }
 0x314   :  { %v2544_v15 = vpop.eup %2543  ;;  %2557 = vrcp.f32 %v1723_v36 }
 0x315   :  { %v2546_v8 = vpop.eup %2545  ;;  %2559 = vrcp.f32 %v1724_v14 }
 0x316   :  { %v1725_v16 = vadd.f32 1.0, %v2546_v8 }
 0x317   :  { %v2548_v17 = vpop.eup %2547 }
 0x318   :  { %v2550_v19 = vpop.eup %2549  ;;  %2561 = vrcp.f32 %v1725_v16 }
 0x319   :  { %v2552_v20 = vpop.eup %2551 }
 0x31a   :  { %v2554_v21 = vpop.eup %2553 }
 0x31d   :  { %v2556_v22 = vpop.eup %2555 }
 0x31e   :  { %v2558_v23 = vpop.eup %2557 }
 0x31f   :  { %v2560_v24 = vpop.eup %2559 }
 0x322   :  { %v2562_v25 = vpop.eup %2561 }
 0x323   :  { %1955 = vsyncpa [#allocation4], 1 }
 0x324   :  { %1956 = vsyncpa [#allocation6], 1 }

</bundles_post_ra>
